<compile_context>
chip_gen: v6e
topology: v6e:2x2x1
jax: 0.10.0
libtpu: 0.0.40
codegen_flags: <defaults>
</compile_context>

<pallas_src>
import jax
import jax.numpy as jnp
from jax.experimental import pallas as pl
from jax.experimental.pallas import tpu as pltpu


def _downsample_kernel(x_ref, a1_ref, w1_ref, b1_ref, a2_ref, w2_ref, b2_ref,
                       o_ref, xp_ref, p_ref, yp_ref):
    # x_ref : (1, 4, Hh, Wh, C0)  phase-split input, x_ref[0, p*2+q, i, j, c] = x[2i+p, 2j+q, c]
    # a1_ref: (1, C0)    w1_ref: (9*C0, C1) bf16    b1_ref: (1, C1)
    # a2_ref: (1, C1)    w2_ref: (9*C1, C2) bf16    b2_ref: (C2, 1)
    # o_ref : (1, C2, Hh*Wh)
    # xp_ref: (4, Hh+1, Wh+1, C0) zero-padded, activated phases (only top/left pad is ever read)
    # p_ref : (Hh, Wh, 9*max(C0,C1)) patch-matrix staging scratch
    # yp_ref: (Hh+2, Wh+2, C1)    zero-padded stage-1 output
    Hh, Wh, C0 = x_ref.shape[2], x_ref.shape[3], x_ref.shape[4]
    C1 = w1_ref.shape[1]
    C2 = w2_ref.shape[1]
    HW = Hh * Wh

    # ---- Stage 1: PReLU(a1) fused into the padded-phase scratch fill (each pixel once).
    alpha1 = a1_ref[...].reshape(1, 1, C0)
    xp_ref[...] = jnp.zeros(xp_ref.shape, xp_ref.dtype)
    for ph in range(4):
        v = x_ref[0, ph]                                        # (Hh, Wh, C0)
        xp_ref[ph, 1:, 1:, :] = jnp.where(v > 0, v, v * alpha1)

    # 3x3 stride-2 conv as ONE matmul: tap (kh,kw) reads phase ((kh-1)%2, (kw-1)%2)
    # at a static row/col offset -- all slices are static and unstrided.
    for kh in range(3):
        dk, pk = divmod(kh - 1, 2)
        for kw in range(3):
            dl, ql = divmod(kw - 1, 2)
            t = kh * 3 + kw
            tap = xp_ref[pk * 2 + ql,
                         dk + 1:dk + 1 + Hh,
                         dl + 1:dl + 1 + Wh, :]                 # (Hh, Wh, C0)
            p_ref[:, :, t * C0:(t + 1) * C0] = tap

    p1 = p_ref[:, :, :9 * C0].reshape(HW, 9 * C0).astype(jnp.bfloat16)
    y1 = jnp.dot(p1, w1_ref[...], preferred_element_type=jnp.float32)    # (HW, C1)
    y1 = y1 + b1_ref[...]

    # ---- Stage 2: PReLU(a2) once, zero-pad, 3x3 stride-1 conv as ONE matmul.
    y1 = jnp.where(y1 > 0, y1, y1 * a2_ref[...])
    yp_ref[...] = jnp.zeros(yp_ref.shape, yp_ref.dtype)
    yp_ref[1:Hh + 1, 1:Wh + 1, :] = y1.reshape(Hh, Wh, C1)
    for kh in range(3):
        for kw in range(3):
            t = kh * 3 + kw
            p_ref[:, :, t * C1:(t + 1) * C1] = yp_ref[kh:kh + Hh, kw:kw + Wh, :]

    p2 = p_ref[:, :, :9 * C1].reshape(HW, 9 * C1).astype(jnp.bfloat16)
    # Transposed matmul -> result is (C2, HW): channels on sublanes, spatial on lanes,
    # so the store is one compact block and the wrapper reshape to NCHW is free.
    y2 = jax.lax.dot_general(w2_ref[...], p2,
                             dimension_numbers=(((0,), (1,)), ((), ())),
                             preferred_element_type=jnp.float32)          # (C2, HW)
    o_ref[0] = (y2 + b2_ref[...]).astype(o_ref.dtype)


def downsample(x_nchw, a1, w1, b1, a2, w2, b2):
    """Full Downsample forward. Input/output NCHW like the PyTorch module.

    w1: (3,3,C0,C1) HWIO, w2: (3,3,C1,C2) HWIO, a*/b*: per-channel vectors.
    """
    N, C0, H, W = x_nchw.shape
    C1 = w1.shape[-1]
    C2 = w2.shape[-1]
    if H % 2 or W % 2:
        # TODO(synk): odd spatial sizes need an extra right/bottom pad phase.
        raise ValueError("downsample kernel expects even H and W")
    Hh, Wh = H // 2, W // 2
    HW = Hh * Wh

    # Free reshapes + one tiny transpose: (N,C,H,W) -> (N, phase=2x2, Hh, Wh, C).
    x6 = (x_nchw.reshape(N, C0, Hh, 2, Wh, 2)
                .transpose(0, 3, 5, 2, 4, 1)
                .reshape(N, 4, Hh, Wh, C0))
    w1m = w1.reshape(9 * C0, C1).astype(jnp.bfloat16)
    w2m = w2.reshape(9 * C1, C2).astype(jnp.bfloat16)
    a1r = a1.reshape(1, C0).astype(jnp.float32)
    b1r = b1.reshape(1, C1).astype(jnp.float32)
    a2r = a2.reshape(1, C1).astype(jnp.float32)
    b2r = b2.reshape(C2, 1).astype(jnp.float32)

    out = pl.pallas_call(
        _downsample_kernel,
        out_shape=jax.ShapeDtypeStruct((N, C2, HW), jnp.float32),
        grid=(N,),
        in_specs=[
            pl.BlockSpec((1, 4, Hh, Wh, C0), lambda n: (n, 0, 0, 0, 0)),
            pl.BlockSpec((1, C0), lambda n: (0, 0)),
            pl.BlockSpec((9 * C0, C1), lambda n: (0, 0)),
            pl.BlockSpec((1, C1), lambda n: (0, 0)),
            pl.BlockSpec((1, C1), lambda n: (0, 0)),
            pl.BlockSpec((9 * C1, C2), lambda n: (0, 0)),
            pl.BlockSpec((C2, 1), lambda n: (0, 0)),
        ],
        out_specs=pl.BlockSpec((1, C2, HW), lambda n: (n, 0, 0)),
        scratch_shapes=[
            pltpu.VMEM((4, Hh + 1, Wh + 1, C0), jnp.float32),         # padded phases
            pltpu.VMEM((Hh, Wh, 9 * max(C0, C1)), jnp.float32),       # patch matrix
            pltpu.VMEM((Hh + 2, Wh + 2, C1), jnp.float32),            # padded stage-1 out
        ],
        compiler_params=pltpu.CompilerParams(
            dimension_semantics=("parallel",)),
    )(x6, a1r, w1m, b1r, a2r, w2m, b2r)

    return out.reshape(N, C2, Hh, Wh)


def reference(x_nchw, a1, w1, b1, a2, w2, b2):
    """Pure-JAX (XLA) reference with identical semantics, for validation."""
    x = jnp.transpose(x_nchw, (0, 2, 3, 1))

    def prelu(v, a):
        return jnp.where(v > 0, v, v * a)

    def conv(v, w, b, s):
        o = jax.lax.conv_general_dilated(
            v, w, window_strides=(s, s), padding=[(1, 1), (1, 1)],
            dimension_numbers=("NHWC", "HWIO", "NHWC"))
        return o + b

    y = conv(prelu(x, a1), w1, b1, 2)
    z = conv(prelu(y, a2), w2, b2, 1)
    return jnp.transpose(z, (0, 3, 1, 2))


if __name__ == "__main__":
    # intChannels = [4, 8, 8]; input (N=2, C=4, H=16, W=16)
    C0, C1, C2 = 4, 8, 8
    N, H, W = 2, 16, 16

    key = jax.random.PRNGKey(0)
    k1, k2, k3, k4, k5 = jax.random.split(key, 5)
    x = jax.random.normal(k1, (N, C0, H, W), jnp.float32)

    # Deterministic synthetic parameters (shapes from the module __init__).
    w1 = jax.random.normal(k2, (3, 3, C0, C1), jnp.float32) * 0.1   # HWIO
    b1 = jax.random.normal(k3, (C1,), jnp.float32) * 0.1
    w2 = jax.random.normal(k4, (3, 3, C1, C2), jnp.float32) * 0.1   # HWIO
    b2 = jax.random.normal(k5, (C2,), jnp.float32) * 0.1
    a1 = jnp.full((C0,), 0.25, jnp.float32)   # PReLU init=0.25
    a2 = jnp.full((C1,), 0.25, jnp.float32)

    out = jax.jit(downsample)(x, a1, w1, b1, a2, w2, b2)
    out = jax.block_until_ready(out)

    ref = reference(x, a1, w1, b1, a2, w2, b2)
    assert out.shape == (N, C2, H // 2, W // 2), out.shape
    assert jnp.allclose(out, ref, atol=3e-2, rtol=3e-2), "mismatch vs XLA reference"

    print("KERNEL_OK")
</pallas_src>

<mosaic_0001>
module attributes {stable_mosaic.version = 11 : i64} {
  func.func @_downsample_kernel(%arg0: i32, %arg1: memref<1x4x8x8x4xf32, #tpu.memory_space<vmem>>, %arg2: memref<1x4xf32, #tpu.memory_space<vmem>>, %arg3: memref<36x8xbf16, #tpu.memory_space<vmem>>, %arg4: memref<1x8xf32, #tpu.memory_space<vmem>>, %arg5: memref<1x8xf32, #tpu.memory_space<vmem>>, %arg6: memref<72x8xbf16, #tpu.memory_space<vmem>>, %arg7: memref<8x1xf32, #tpu.memory_space<vmem>>, %arg8: memref<1x8x64xf32, #tpu.memory_space<vmem>>, %arg9: memref<4x9x9x4xf32, #tpu.memory_space<vmem>>, %arg10: memref<8x8x72xf32, #tpu.memory_space<vmem>>, %arg11: memref<10x10x8xf32, #tpu.memory_space<vmem>>) attributes {dimension_semantics = [#tpu.dimension_semantics<parallel>], iteration_bounds = array<i64: 2>, scalar_prefetch = 0 : i64, scratch_operands = 3 : i64, tpu.core_type = #tpu.core_type<tc>, window_params = [{transform_indices = @transform_0, window_bounds = array<i64: 1, 4, 8, 8, 4>}, {pipeline_mode = #tpu.pipeline_mode<synchronous>, transform_indices = @transform_1, window_bounds = array<i64: 1, 4>}, {pipeline_mode = #tpu.pipeline_mode<synchronous>, transform_indices = @transform_2, window_bounds = array<i64: 36, 8>}, {pipeline_mode = #tpu.pipeline_mode<synchronous>, transform_indices = @transform_3, window_bounds = array<i64: 1, 8>}, {pipeline_mode = #tpu.pipeline_mode<synchronous>, transform_indices = @transform_4, window_bounds = array<i64: 1, 8>}, {pipeline_mode = #tpu.pipeline_mode<synchronous>, transform_indices = @transform_5, window_bounds = array<i64: 72, 8>}, {pipeline_mode = #tpu.pipeline_mode<synchronous>, transform_indices = @transform_6, window_bounds = array<i64: 8, 1>}, {transform_indices = @transform_7, window_bounds = array<i64: 1, 8, 64>}]} {
    %c0 = arith.constant 0 : index
    %c0_0 = arith.constant 0 : index
    %0 = vector.load %arg2[%c0, %c0_0] : memref<1x4xf32, #tpu.memory_space<vmem>>, vector<1x4xf32>
    %1 = vector.shape_cast %0 : vector<1x4xf32> to vector<1x1x4xf32>
    %cst = arith.constant 0.000000e+00 : f32
    %2 = vector.broadcast %cst : f32 to vector<4x9x9x4xf32>
    %c0_1 = arith.constant 0 : index
    %c0_2 = arith.constant 0 : index
    %c0_3 = arith.constant 0 : index
    %c0_4 = arith.constant 0 : index
    %3 = vector.load %arg9[%c0_1, %c0_2, %c0_3, %c0_4] : memref<4x9x9x4xf32, #tpu.memory_space<vmem>>, vector<4x9x9x4xf32>
    tpu.vector_store %arg9[%c0_1, %c0_2, %c0_3, %c0_4], %2 {strides = array<i32>} : memref<4x9x9x4xf32, #tpu.memory_space<vmem>>, vector<4x9x9x4xf32>,
    %c0_5 = arith.constant 0 : index
    %c0_6 = arith.constant 0 : index
    %c0_7 = arith.constant 0 : index
    %c0_8 = arith.constant 0 : index
    %c0_9 = arith.constant 0 : index
    %4 = vector.load %arg1[%c0_5, %c0_6, %c0_7, %c0_8, %c0_9] : memref<1x4x8x8x4xf32, #tpu.memory_space<vmem>>, vector<1x1x8x8x4xf32>
    %5 = vector.shape_cast %4 : vector<1x1x8x8x4xf32> to vector<8x8x4xf32>
    %cst_10 = arith.constant 0.000000e+00 : f32
    %6 = vector.broadcast %cst_10 : f32 to vector<8x8x4xf32>
    %7 = arith.cmpf ogt, %5, %6 : vector<8x8x4xf32>
    %8 = vector.broadcast %1 : vector<1x1x4xf32> to vector<8x8x4xf32>
    %9 = arith.mulf %5, %8 : vector<8x8x4xf32>
    %10 = arith.select %7, %5, %9 : vector<8x8x4xi1>, vector<8x8x4xf32>
    %c0_11 = arith.constant 0 : index
    %c1 = arith.constant 1 : index
    %c1_12 = arith.constant 1 : index
    %c0_13 = arith.constant 0 : index
    %11 = vector.load %arg9[%c0_11, %c1, %c1_12, %c0_13] : memref<4x9x9x4xf32, #tpu.memory_space<vmem>>, vector<1x8x8x4xf32>
    %12 = vector.shape_cast %11 : vector<1x8x8x4xf32> to vector<8x8x4xf32>
    %13 = vector.shape_cast %10 : vector<8x8x4xf32> to vector<1x8x8x4xf32>
    tpu.vector_store %arg9[%c0_11, %c1, %c1_12, %c0_13], %13 {strides = array<i32>} : memref<4x9x9x4xf32, #tpu.memory_space<vmem>>, vector<1x8x8x4xf32>,
    %c0_14 = arith.constant 0 : index
    %c1_15 = arith.constant 1 : index
    %c0_16 = arith.constant 0 : index
    %c0_17 = arith.constant 0 : index
    %c0_18 = arith.constant 0 : index
    %14 = vector.load %arg1[%c0_14, %c1_15, %c0_16, %c0_17, %c0_18] : memref<1x4x8x8x4xf32, #tpu.memory_space<vmem>>, vector<1x1x8x8x4xf32>
    %15 = vector.shape_cast %14 : vector<1x1x8x8x4xf32> to vector<8x8x4xf32>
    %cst_19 = arith.constant 0.000000e+00 : f32
    %16 = vector.broadcast %cst_19 : f32 to vector<8x8x4xf32>
    %17 = arith.cmpf ogt, %15, %16 : vector<8x8x4xf32>
    %18 = vector.broadcast %1 : vector<1x1x4xf32> to vector<8x8x4xf32>
    %19 = arith.mulf %15, %18 : vector<8x8x4xf32>
    %20 = arith.select %17, %15, %19 : vector<8x8x4xi1>, vector<8x8x4xf32>
    %c1_20 = arith.constant 1 : index
    %c1_21 = arith.constant 1 : index
    %c1_22 = arith.constant 1 : index
    %c0_23 = arith.constant 0 : index
    %21 = vector.load %arg9[%c1_20, %c1_21, %c1_22, %c0_23] : memref<4x9x9x4xf32, #tpu.memory_space<vmem>>, vector<1x8x8x4xf32>
    %22 = vector.shape_cast %21 : vector<1x8x8x4xf32> to vector<8x8x4xf32>
    %23 = vector.shape_cast %20 : vector<8x8x4xf32> to vector<1x8x8x4xf32>
    tpu.vector_store %arg9[%c1_20, %c1_21, %c1_22, %c0_23], %23 {strides = array<i32>} : memref<4x9x9x4xf32, #tpu.memory_space<vmem>>, vector<1x8x8x4xf32>,
    %c0_24 = arith.constant 0 : index
    %c2 = arith.constant 2 : index
    %c0_25 = arith.constant 0 : index
    %c0_26 = arith.constant 0 : index
    %c0_27 = arith.constant 0 : index
    %24 = vector.load %arg1[%c0_24, %c2, %c0_25, %c0_26, %c0_27] : memref<1x4x8x8x4xf32, #tpu.memory_space<vmem>>, vector<1x1x8x8x4xf32>
    %25 = vector.shape_cast %24 : vector<1x1x8x8x4xf32> to vector<8x8x4xf32>
    %cst_28 = arith.constant 0.000000e+00 : f32
    %26 = vector.broadcast %cst_28 : f32 to vector<8x8x4xf32>
    %27 = arith.cmpf ogt, %25, %26 : vector<8x8x4xf32>
    %28 = vector.broadcast %1 : vector<1x1x4xf32> to vector<8x8x4xf32>
    %29 = arith.mulf %25, %28 : vector<8x8x4xf32>
    %30 = arith.select %27, %25, %29 : vector<8x8x4xi1>, vector<8x8x4xf32>
    %c2_29 = arith.constant 2 : index
    %c1_30 = arith.constant 1 : index
    %c1_31 = arith.constant 1 : index
    %c0_32 = arith.constant 0 : index
    %31 = vector.load %arg9[%c2_29, %c1_30, %c1_31, %c0_32] : memref<4x9x9x4xf32, #tpu.memory_space<vmem>>, vector<1x8x8x4xf32>
    %32 = vector.shape_cast %31 : vector<1x8x8x4xf32> to vector<8x8x4xf32>
    %33 = vector.shape_cast %30 : vector<8x8x4xf32> to vector<1x8x8x4xf32>
    tpu.vector_store %arg9[%c2_29, %c1_30, %c1_31, %c0_32], %33 {strides = array<i32>} : memref<4x9x9x4xf32, #tpu.memory_space<vmem>>, vector<1x8x8x4xf32>,
    %c0_33 = arith.constant 0 : index
    %c3 = arith.constant 3 : index
    %c0_34 = arith.constant 0 : index
    %c0_35 = arith.constant 0 : index
    %c0_36 = arith.constant 0 : index
    %34 = vector.load %arg1[%c0_33, %c3, %c0_34, %c0_35, %c0_36] : memref<1x4x8x8x4xf32, #tpu.memory_space<vmem>>, vector<1x1x8x8x4xf32>
    %35 = vector.shape_cast %34 : vector<1x1x8x8x4xf32> to vector<8x8x4xf32>
    %cst_37 = arith.constant 0.000000e+00 : f32
    %36 = vector.broadcast %cst_37 : f32 to vector<8x8x4xf32>
    %37 = arith.cmpf ogt, %35, %36 : vector<8x8x4xf32>
    %38 = vector.broadcast %1 : vector<1x1x4xf32> to vector<8x8x4xf32>
    %39 = arith.mulf %35, %38 : vector<8x8x4xf32>
    %40 = arith.select %37, %35, %39 : vector<8x8x4xi1>, vector<8x8x4xf32>
    %c3_38 = arith.constant 3 : index
    %c1_39 = arith.constant 1 : index
    %c1_40 = arith.constant 1 : index
    %c0_41 = arith.constant 0 : index
    %41 = vector.load %arg9[%c3_38, %c1_39, %c1_40, %c0_41] : memref<4x9x9x4xf32, #tpu.memory_space<vmem>>, vector<1x8x8x4xf32>
    %42 = vector.shape_cast %41 : vector<1x8x8x4xf32> to vector<8x8x4xf32>
    %43 = vector.shape_cast %40 : vector<8x8x4xf32> to vector<1x8x8x4xf32>
    tpu.vector_store %arg9[%c3_38, %c1_39, %c1_40, %c0_41], %43 {strides = array<i32>} : memref<4x9x9x4xf32, #tpu.memory_space<vmem>>, vector<1x8x8x4xf32>,
    %c3_42 = arith.constant 3 : index
    %c0_43 = arith.constant 0 : index
    %c0_44 = arith.constant 0 : index
    %c0_45 = arith.constant 0 : index
    %44 = vector.load %arg9[%c3_42, %c0_43, %c0_44, %c0_45] : memref<4x9x9x4xf32, #tpu.memory_space<vmem>>, vector<1x8x8x4xf32>
    %45 = vector.shape_cast %44 : vector<1x8x8x4xf32> to vector<8x8x4xf32>
    %c0_46 = arith.constant 0 : index
    %c0_47 = arith.constant 0 : index
    %c0_48 = arith.constant 0 : index
    %46 = vector.load %arg10[%c0_46, %c0_47, %c0_48] : memref<8x8x72xf32, #tpu.memory_space<vmem>>, vector<8x8x4xf32>
    tpu.vector_store %arg10[%c0_46, %c0_47, %c0_48], %45 {strides = array<i32>} : memref<8x8x72xf32, #tpu.memory_space<vmem>>, vector<8x8x4xf32>,
    %c2_49 = arith.constant 2 : index
    %c0_50 = arith.constant 0 : index
    %c1_51 = arith.constant 1 : index
    %c0_52 = arith.constant 0 : index
    %47 = vector.load %arg9[%c2_49, %c0_50, %c1_51, %c0_52] : memref<4x9x9x4xf32, #tpu.memory_space<vmem>>, vector<1x8x8x4xf32>
    %48 = vector.shape_cast %47 : vector<1x8x8x4xf32> to vector<8x8x4xf32>
    %c0_53 = arith.constant 0 : index
    %c0_54 = arith.constant 0 : index
    %c4 = arith.constant 4 : index
    %49 = vector.load %arg10[%c0_53, %c0_54, %c4] : memref<8x8x72xf32, #tpu.memory_space<vmem>>, vector<8x8x4xf32>
    tpu.vector_store %arg10[%c0_53, %c0_54, %c4], %48 {strides = array<i32>} : memref<8x8x72xf32, #tpu.memory_space<vmem>>, vector<8x8x4xf32>,
    %c3_55 = arith.constant 3 : index
    %c0_56 = arith.constant 0 : index
    %c1_57 = arith.constant 1 : index
    %c0_58 = arith.constant 0 : index
    %50 = vector.load %arg9[%c3_55, %c0_56, %c1_57, %c0_58] : memref<4x9x9x4xf32, #tpu.memory_space<vmem>>, vector<1x8x8x4xf32>
    %51 = vector.shape_cast %50 : vector<1x8x8x4xf32> to vector<8x8x4xf32>
    %c0_59 = arith.constant 0 : index
    %c0_60 = arith.constant 0 : index
    %c8 = arith.constant 8 : index
    %52 = vector.load %arg10[%c0_59, %c0_60, %c8] : memref<8x8x72xf32, #tpu.memory_space<vmem>>, vector<8x8x4xf32>
    tpu.vector_store %arg10[%c0_59, %c0_60, %c8], %51 {strides = array<i32>} : memref<8x8x72xf32, #tpu.memory_space<vmem>>, vector<8x8x4xf32>,
    %c1_61 = arith.constant 1 : index
    %c1_62 = arith.constant 1 : index
    %c0_63 = arith.constant 0 : index
    %c0_64 = arith.constant 0 : index
    %53 = vector.load %arg9[%c1_61, %c1_62, %c0_63, %c0_64] : memref<4x9x9x4xf32, #tpu.memory_space<vmem>>, vector<1x8x8x4xf32>
    %54 = vector.shape_cast %53 : vector<1x8x8x4xf32> to vector<8x8x4xf32>
    %c0_65 = arith.constant 0 : index
    %c0_66 = arith.constant 0 : index
    %c12 = arith.constant 12 : index
    %55 = vector.load %arg10[%c0_65, %c0_66, %c12] : memref<8x8x72xf32, #tpu.memory_space<vmem>>, vector<8x8x4xf32>
    tpu.vector_store %arg10[%c0_65, %c0_66, %c12], %54 {strides = array<i32>} : memref<8x8x72xf32, #tpu.memory_space<vmem>>, vector<8x8x4xf32>,
    %c0_67 = arith.constant 0 : index
    %c1_68 = arith.constant 1 : index
    %c1_69 = arith.constant 1 : index
    %c0_70 = arith.constant 0 : index
    %56 = vector.load %arg9[%c0_67, %c1_68, %c1_69, %c0_70] : memref<4x9x9x4xf32, #tpu.memory_space<vmem>>, vector<1x8x8x4xf32>
    %57 = vector.shape_cast %56 : vector<1x8x8x4xf32> to vector<8x8x4xf32>
    %c0_71 = arith.constant 0 : index
    %c0_72 = arith.constant 0 : index
    %c16 = arith.constant 16 : index
    %58 = vector.load %arg10[%c0_71, %c0_72, %c16] : memref<8x8x72xf32, #tpu.memory_space<vmem>>, vector<8x8x4xf32>
    tpu.vector_store %arg10[%c0_71, %c0_72, %c16], %57 {strides = array<i32>} : memref<8x8x72xf32, #tpu.memory_space<vmem>>, vector<8x8x4xf32>,
    %c1_73 = arith.constant 1 : index
    %c1_74 = arith.constant 1 : index
    %c1_75 = arith.constant 1 : index
    %c0_76 = arith.constant 0 : index
    %59 = vector.load %arg9[%c1_73, %c1_74, %c1_75, %c0_76] : memref<4x9x9x4xf32, #tpu.memory_space<vmem>>, vector<1x8x8x4xf32>
    %60 = vector.shape_cast %59 : vector<1x8x8x4xf32> to vector<8x8x4xf32>
    %c0_77 = arith.constant 0 : index
    %c0_78 = arith.constant 0 : index
    %c20 = arith.constant 20 : index
    %61 = vector.load %arg10[%c0_77, %c0_78, %c20] : memref<8x8x72xf32, #tpu.memory_space<vmem>>, vector<8x8x4xf32>
    tpu.vector_store %arg10[%c0_77, %c0_78, %c20], %60 {strides = array<i32>} : memref<8x8x72xf32, #tpu.memory_space<vmem>>, vector<8x8x4xf32>,
    %c3_79 = arith.constant 3 : index
    %c1_80 = arith.constant 1 : index
    %c0_81 = arith.constant 0 : index
    %c0_82 = arith.constant 0 : index
    %62 = vector.load %arg9[%c3_79, %c1_80, %c0_81, %c0_82] : memref<4x9x9x4xf32, #tpu.memory_space<vmem>>, vector<1x8x8x4xf32>
    %63 = vector.shape_cast %62 : vector<1x8x8x4xf32> to vector<8x8x4xf32>
    %c0_83 = arith.constant 0 : index
    %c0_84 = arith.constant 0 : index
    %c24 = arith.constant 24 : index
    %64 = vector.load %arg10[%c0_83, %c0_84, %c24] : memref<8x8x72xf32, #tpu.memory_space<vmem>>, vector<8x8x4xf32>
    tpu.vector_store %arg10[%c0_83, %c0_84, %c24], %63 {strides = array<i32>} : memref<8x8x72xf32, #tpu.memory_space<vmem>>, vector<8x8x4xf32>,
    %c2_85 = arith.constant 2 : index
    %c1_86 = arith.constant 1 : index
    %c1_87 = arith.constant 1 : index
    %c0_88 = arith.constant 0 : index
    %65 = vector.load %arg9[%c2_85, %c1_86, %c1_87, %c0_88] : memref<4x9x9x4xf32, #tpu.memory_space<vmem>>, vector<1x8x8x4xf32>
    %66 = vector.shape_cast %65 : vector<1x8x8x4xf32> to vector<8x8x4xf32>
    %c0_89 = arith.constant 0 : index
    %c0_90 = arith.constant 0 : index
    %c28 = arith.constant 28 : index
    %67 = vector.load %arg10[%c0_89, %c0_90, %c28] : memref<8x8x72xf32, #tpu.memory_space<vmem>>, vector<8x8x4xf32>
    tpu.vector_store %arg10[%c0_89, %c0_90, %c28], %66 {strides = array<i32>} : memref<8x8x72xf32, #tpu.memory_space<vmem>>, vector<8x8x4xf32>,
    %c3_91 = arith.constant 3 : index
    %c1_92 = arith.constant 1 : index
    %c1_93 = arith.constant 1 : index
    %c0_94 = arith.constant 0 : index
    %68 = vector.load %arg9[%c3_91, %c1_92, %c1_93, %c0_94] : memref<4x9x9x4xf32, #tpu.memory_space<vmem>>, vector<1x8x8x4xf32>
    %69 = vector.shape_cast %68 : vector<1x8x8x4xf32> to vector<8x8x4xf32>
    %c0_95 = arith.constant 0 : index
    %c0_96 = arith.constant 0 : index
    %c32 = arith.constant 32 : index
    %70 = vector.load %arg10[%c0_95, %c0_96, %c32] : memref<8x8x72xf32, #tpu.memory_space<vmem>>, vector<8x8x4xf32>
    tpu.vector_store %arg10[%c0_95, %c0_96, %c32], %69 {strides = array<i32>} : memref<8x8x72xf32, #tpu.memory_space<vmem>>, vector<8x8x4xf32>,
    %c0_97 = arith.constant 0 : index
    %c0_98 = arith.constant 0 : index
    %c0_99 = arith.constant 0 : index
    %71 = vector.load %arg10[%c0_97, %c0_98, %c0_99] : memref<8x8x72xf32, #tpu.memory_space<vmem>>, vector<8x8x36xf32>
    %72 = vector.shape_cast %71 : vector<8x8x36xf32> to vector<64x36xf32>
    %73 = arith.truncf %72 : vector<64x36xf32> to vector<64x36xbf16>
    %c0_100 = arith.constant 0 : index
    %c0_101 = arith.constant 0 : index
    %74 = vector.load %arg3[%c0_100, %c0_101] : memref<36x8xbf16, #tpu.memory_space<vmem>>, vector<36x8xbf16>
    %cst_102 = arith.constant dense<0.000000e+00> : vector<64x8xf32>
    %75 = tpu.matmul %73, %74, %cst_102 {dimension_numbers = #tpu.dot_dimension_numbers<[1], [0], [0], [1], [0, 0, 1, 1], [], []>} : vector<64x36xbf16>, vector<36x8xbf16>, vector<64x8xf32> -> vector<64x8xf32>
    %c0_103 = arith.constant 0 : index
    %c0_104 = arith.constant 0 : index
    %76 = vector.load %arg4[%c0_103, %c0_104] : memref<1x8xf32, #tpu.memory_space<vmem>>, vector<1x8xf32>
    %77 = vector.broadcast %76 : vector<1x8xf32> to vector<64x8xf32>
    %78 = arith.addf %75, %77 : vector<64x8xf32>
    %cst_105 = arith.constant 0.000000e+00 : f32
    %79 = vector.broadcast %cst_105 : f32 to vector<64x8xf32>
    %80 = arith.cmpf ogt, %78, %79 : vector<64x8xf32>
    %c0_106 = arith.constant 0 : index
    %c0_107 = arith.constant 0 : index
    %81 = vector.load %arg5[%c0_106, %c0_107] : memref<1x8xf32, #tpu.memory_space<vmem>>, vector<1x8xf32>
    %82 = vector.broadcast %81 : vector<1x8xf32> to vector<64x8xf32>
    %83 = arith.mulf %78, %82 : vector<64x8xf32>
    %84 = arith.select %80, %78, %83 : vector<64x8xi1>, vector<64x8xf32>
    %cst_108 = arith.constant 0.000000e+00 : f32
    %85 = vector.broadcast %cst_108 : f32 to vector<10x10x8xf32>
    %c0_109 = arith.constant 0 : index
    %c0_110 = arith.constant 0 : index
    %c0_111 = arith.constant 0 : index
    %86 = vector.load %arg11[%c0_109, %c0_110, %c0_111] : memref<10x10x8xf32, #tpu.memory_space<vmem>>, vector<10x10x8xf32>
    tpu.vector_store %arg11[%c0_109, %c0_110, %c0_111], %85 {strides = array<i32>} : memref<10x10x8xf32, #tpu.memory_space<vmem>>, vector<10x10x8xf32>,
    %87 = vector.shape_cast %84 : vector<64x8xf32> to vector<8x8x8xf32>
    %c1_112 = arith.constant 1 : index
    %c1_113 = arith.constant 1 : index
    %c0_114 = arith.constant 0 : index
    %88 = vector.load %arg11[%c1_112, %c1_113, %c0_114] : memref<10x10x8xf32, #tpu.memory_space<vmem>>, vector<8x8x8xf32>
    tpu.vector_store %arg11[%c1_112, %c1_113, %c0_114], %87 {strides = array<i32>} : memref<10x10x8xf32, #tpu.memory_space<vmem>>, vector<8x8x8xf32>,
    %c0_115 = arith.constant 0 : index
    %c0_116 = arith.constant 0 : index
    %c0_117 = arith.constant 0 : index
    %89 = vector.load %arg11[%c0_115, %c0_116, %c0_117] : memref<10x10x8xf32, #tpu.memory_space<vmem>>, vector<8x8x8xf32>
    %c0_118 = arith.constant 0 : index
    %c0_119 = arith.constant 0 : index
    %c0_120 = arith.constant 0 : index
    %90 = vector.load %arg10[%c0_118, %c0_119, %c0_120] : memref<8x8x72xf32, #tpu.memory_space<vmem>>, vector<8x8x8xf32>
    tpu.vector_store %arg10[%c0_118, %c0_119, %c0_120], %89 {strides = array<i32>} : memref<8x8x72xf32, #tpu.memory_space<vmem>>, vector<8x8x8xf32>,
    %c0_121 = arith.constant 0 : index
    %c1_122 = arith.constant 1 : index
    %c0_123 = arith.constant 0 : index
    %91 = vector.load %arg11[%c0_121, %c1_122, %c0_123] : memref<10x10x8xf32, #tpu.memory_space<vmem>>, vector<8x8x8xf32>
    %c0_124 = arith.constant 0 : index
    %c0_125 = arith.constant 0 : index
    %c8_126 = arith.constant 8 : index
    %92 = vector.load %arg10[%c0_124, %c0_125, %c8_126] : memref<8x8x72xf32, #tpu.memory_space<vmem>>, vector<8x8x8xf32>
    tpu.vector_store %arg10[%c0_124, %c0_125, %c8_126], %91 {strides = array<i32>} : memref<8x8x72xf32, #tpu.memory_space<vmem>>, vector<8x8x8xf32>,
    %c0_127 = arith.constant 0 : index
    %c2_128 = arith.constant 2 : index
    %c0_129 = arith.constant 0 : index
    %93 = vector.load %arg11[%c0_127, %c2_128, %c0_129] : memref<10x10x8xf32, #tpu.memory_space<vmem>>, vector<8x8x8xf32>
    %c0_130 = arith.constant 0 : index
    %c0_131 = arith.constant 0 : index
    %c16_132 = arith.constant 16 : index
    %94 = vector.load %arg10[%c0_130, %c0_131, %c16_132] : memref<8x8x72xf32, #tpu.memory_space<vmem>>, vector<8x8x8xf32>
    tpu.vector_store %arg10[%c0_130, %c0_131, %c16_132], %93 {strides = array<i32>} : memref<8x8x72xf32, #tpu.memory_space<vmem>>, vector<8x8x8xf32>,
    %c1_133 = arith.constant 1 : index
    %c0_134 = arith.constant 0 : index
    %c0_135 = arith.constant 0 : index
    %95 = vector.load %arg11[%c1_133, %c0_134, %c0_135] : memref<10x10x8xf32, #tpu.memory_space<vmem>>, vector<8x8x8xf32>
    %c0_136 = arith.constant 0 : index
    %c0_137 = arith.constant 0 : index
    %c24_138 = arith.constant 24 : index
    %96 = vector.load %arg10[%c0_136, %c0_137, %c24_138] : memref<8x8x72xf32, #tpu.memory_space<vmem>>, vector<8x8x8xf32>
    tpu.vector_store %arg10[%c0_136, %c0_137, %c24_138], %95 {strides = array<i32>} : memref<8x8x72xf32, #tpu.memory_space<vmem>>, vector<8x8x8xf32>,
    %c1_139 = arith.constant 1 : index
    %c1_140 = arith.constant 1 : index
    %c0_141 = arith.constant 0 : index
    %97 = vector.load %arg11[%c1_139, %c1_140, %c0_141] : memref<10x10x8xf32, #tpu.memory_space<vmem>>, vector<8x8x8xf32>
    %c0_142 = arith.constant 0 : index
    %c0_143 = arith.constant 0 : index
    %c32_144 = arith.constant 32 : index
    %98 = vector.load %arg10[%c0_142, %c0_143, %c32_144] : memref<8x8x72xf32, #tpu.memory_space<vmem>>, vector<8x8x8xf32>
    tpu.vector_store %arg10[%c0_142, %c0_143, %c32_144], %97 {strides = array<i32>} : memref<8x8x72xf32, #tpu.memory_space<vmem>>, vector<8x8x8xf32>,
    %c1_145 = arith.constant 1 : index
    %c2_146 = arith.constant 2 : index
    %c0_147 = arith.constant 0 : index
    %99 = vector.load %arg11[%c1_145, %c2_146, %c0_147] : memref<10x10x8xf32, #tpu.memory_space<vmem>>, vector<8x8x8xf32>
    %c0_148 = arith.constant 0 : index
    %c0_149 = arith.constant 0 : index
    %c40 = arith.constant 40 : index
    %100 = vector.load %arg10[%c0_148, %c0_149, %c40] : memref<8x8x72xf32, #tpu.memory_space<vmem>>, vector<8x8x8xf32>
    tpu.vector_store %arg10[%c0_148, %c0_149, %c40], %99 {strides = array<i32>} : memref<8x8x72xf32, #tpu.memory_space<vmem>>, vector<8x8x8xf32>,
    %c2_150 = arith.constant 2 : index
    %c0_151 = arith.constant 0 : index
    %c0_152 = arith.constant 0 : index
    %101 = vector.load %arg11[%c2_150, %c0_151, %c0_152] : memref<10x10x8xf32, #tpu.memory_space<vmem>>, vector<8x8x8xf32>
    %c0_153 = arith.constant 0 : index
    %c0_154 = arith.constant 0 : index
    %c48 = arith.constant 48 : index
    %102 = vector.load %arg10[%c0_153, %c0_154, %c48] : memref<8x8x72xf32, #tpu.memory_space<vmem>>, vector<8x8x8xf32>
    tpu.vector_store %arg10[%c0_153, %c0_154, %c48], %101 {strides = array<i32>} : memref<8x8x72xf32, #tpu.memory_space<vmem>>, vector<8x8x8xf32>,
    %c2_155 = arith.constant 2 : index
    %c1_156 = arith.constant 1 : index
    %c0_157 = arith.constant 0 : index
    %103 = vector.load %arg11[%c2_155, %c1_156, %c0_157] : memref<10x10x8xf32, #tpu.memory_space<vmem>>, vector<8x8x8xf32>
    %c0_158 = arith.constant 0 : index
    %c0_159 = arith.constant 0 : index
    %c56 = arith.constant 56 : index
    %104 = vector.load %arg10[%c0_158, %c0_159, %c56] : memref<8x8x72xf32, #tpu.memory_space<vmem>>, vector<8x8x8xf32>
    tpu.vector_store %arg10[%c0_158, %c0_159, %c56], %103 {strides = array<i32>} : memref<8x8x72xf32, #tpu.memory_space<vmem>>, vector<8x8x8xf32>,
    %c2_160 = arith.constant 2 : index
    %c2_161 = arith.constant 2 : index
    %c0_162 = arith.constant 0 : index
    %105 = vector.load %arg11[%c2_160, %c2_161, %c0_162] : memref<10x10x8xf32, #tpu.memory_space<vmem>>, vector<8x8x8xf32>
    %c0_163 = arith.constant 0 : index
    %c0_164 = arith.constant 0 : index
    %c64 = arith.constant 64 : index
    %106 = vector.load %arg10[%c0_163, %c0_164, %c64] : memref<8x8x72xf32, #tpu.memory_space<vmem>>, vector<8x8x8xf32>
    tpu.vector_store %arg10[%c0_163, %c0_164, %c64], %105 {strides = array<i32>} : memref<8x8x72xf32, #tpu.memory_space<vmem>>, vector<8x8x8xf32>,
    %c0_165 = arith.constant 0 : index
    %c0_166 = arith.constant 0 : index
    %c0_167 = arith.constant 0 : index
    %107 = vector.load %arg10[%c0_165, %c0_166, %c0_167] : memref<8x8x72xf32, #tpu.memory_space<vmem>>, vector<8x8x72xf32>
    %108 = vector.shape_cast %107 : vector<8x8x72xf32> to vector<64x72xf32>
    %109 = arith.truncf %108 : vector<64x72xf32> to vector<64x72xbf16>
    %c0_168 = arith.constant 0 : index
    %c0_169 = arith.constant 0 : index
    %110 = vector.load %arg6[%c0_168, %c0_169] : memref<72x8xbf16, #tpu.memory_space<vmem>>, vector<72x8xbf16>
    %cst_170 = arith.constant dense<0.000000e+00> : vector<8x64xf32>
    %111 = tpu.matmul %110, %109, %cst_170 {dimension_numbers = #tpu.dot_dimension_numbers<[0], [1], [1], [0], [0, 1, 1, 0], [], []>} : vector<72x8xbf16>, vector<64x72xbf16>, vector<8x64xf32> -> vector<8x64xf32>
    %c0_171 = arith.constant 0 : index
    %c0_172 = arith.constant 0 : index
    %112 = vector.load %arg7[%c0_171, %c0_172] : memref<8x1xf32, #tpu.memory_space<vmem>>, vector<8x1xf32>
    %113 = vector.broadcast %112 : vector<8x1xf32> to vector<8x64xf32>
    %114 = arith.addf %111, %113 : vector<8x64xf32>
    %c0_173 = arith.constant 0 : index
    %c0_174 = arith.constant 0 : index
    %c0_175 = arith.constant 0 : index
    %115 = vector.load %arg8[%c0_173, %c0_174, %c0_175] : memref<1x8x64xf32, #tpu.memory_space<vmem>>, vector<1x8x64xf32>
    %116 = vector.shape_cast %115 : vector<1x8x64xf32> to vector<8x64xf32>
    %117 = vector.shape_cast %114 : vector<8x64xf32> to vector<1x8x64xf32>
    tpu.vector_store %arg8[%c0_173, %c0_174, %c0_175], %117 {strides = array<i32>} : memref<1x8x64xf32, #tpu.memory_space<vmem>>, vector<1x8x64xf32>,
    return
  }
  func.func @transform_0(%arg0: i32) -> (i32, i32, i32, i32, i32) {
    %c0_i32 = arith.constant 0 : i32
    %c0_i32_0 = arith.constant 0 : i32
    %c0_i32_1 = arith.constant 0 : i32
    %c0_i32_2 = arith.constant 0 : i32
    %c0_i32_3 = arith.constant 0 : i32
    return %arg0, %c0_i32, %c0_i32_0, %c0_i32_1, %c0_i32_2 : i32, i32, i32, i32, i32
  }
  func.func @transform_1(%arg0: i32) -> (i32, i32) {
    %c0_i32 = arith.constant 0 : i32
    %c0_i32_0 = arith.constant 0 : i32
    %c0_i32_1 = arith.constant 0 : i32
    return %c0_i32, %c0_i32_0 : i32, i32
  }
  func.func @transform_2(%arg0: i32) -> (i32, i32) {
    %c0_i32 = arith.constant 0 : i32
    %c0_i32_0 = arith.constant 0 : i32
    %c0_i32_1 = arith.constant 0 : i32
    return %c0_i32, %c0_i32_0 : i32, i32
  }
  func.func @transform_3(%arg0: i32) -> (i32, i32) {
    %c0_i32 = arith.constant 0 : i32
    %c0_i32_0 = arith.constant 0 : i32
    %c0_i32_1 = arith.constant 0 : i32
    return %c0_i32, %c0_i32_0 : i32, i32
  }
  func.func @transform_4(%arg0: i32) -> (i32, i32) {
    %c0_i32 = arith.constant 0 : i32
    %c0_i32_0 = arith.constant 0 : i32
    %c0_i32_1 = arith.constant 0 : i32
    return %c0_i32, %c0_i32_0 : i32, i32
  }
  func.func @transform_5(%arg0: i32) -> (i32, i32) {
    %c0_i32 = arith.constant 0 : i32
    %c0_i32_0 = arith.constant 0 : i32
    %c0_i32_1 = arith.constant 0 : i32
    return %c0_i32, %c0_i32_0 : i32, i32
  }
  func.func @transform_6(%arg0: i32) -> (i32, i32) {
    %c0_i32 = arith.constant 0 : i32
    %c0_i32_0 = arith.constant 0 : i32
    %c0_i32_1 = arith.constant 0 : i32
    return %c0_i32, %c0_i32_0 : i32, i32
  }
  func.func @transform_7(%arg0: i32) -> (i32, i32, i32) {
    %c0_i32 = arith.constant 0 : i32
    %c0_i32_0 = arith.constant 0 : i32
    %c0_i32_1 = arith.constant 0 : i32
    return %arg0, %c0_i32, %c0_i32_0 : i32, i32, i32
  }
}

</mosaic_0001>

<bundles_post_ra>
// kernel: downsample.1
= control target key start
LH: loop header
LB: loop body
LE: loop exit
PB: predicated region body
PF: predicated region fallthrough
CT: control target
= control target key end

     0   :  { %s1896_s24 = smov 0   ;;  %s2659_s0 = inlined_call_operand.vmem [shape: f32[2,4,8,8,4], index: 0, kind: input, shape index: {}]   ;;  %s2660_s1 = inlined_call_operand.vmem [shape: f32[1,4], index: 1, kind: input, shape index: {}]   ;;  %s2661_s2 = inlined_call_operand.vmem [shape: bf16[36,8], index: 2, kind: input, shape index: {}]   ;;  %s2662_s3 = inlined_call_operand.vmem [shape: f32[1,8], index: 3, kind: input, shape index: {}]   ;;  %s2663_s4 = inlined_call_operand.vmem [shape: f32[1,8], index: 4, kind: input, shape index: {}]   ;;  %s2664_s5 = inlined_call_operand.vmem [shape: bf16[72,8], index: 5, kind: input, shape index: {}]   ;;  %s2665_s6 = inlined_call_operand.vmem [shape: f32[8,1], index: 6, kind: input, shape index: {}]   ;;  %s2666_s7 = inlined_call_operand.vmem [shape: f32[2,8,64], index: 7, kind: output, shape index: {}]  }
   0x1 LB: > { %s1710_s25 = sadd.s32 4294967295, %s1839_s24   ;;  %p1714_p0 = scmp.ge.s32.totalorder %s1839_s24, 1  ;;  %s1839_s24 = sphi %s1896_s24, %s17_s24  }
   0x2   : > { %p237_p1 = scmp.lt.s32.totalorder %s1839_s24, 3 }
   0x4   : > { %p238_p2 = pnand %p1714_p0, %p237_p1 }
   0x5   : > { %p1906_p3 = scmp.lt.s32.totalorder (!%p238_p2), %s1710_s25, 1  ;;  %s1842_s10 = smov (!%p238_p2), 4  }
   0x6   : > { %241 = sbr.rel (%p238_p2) target bundleno = 922 (0x39a), region = 48  ;;  %s1843_s11 = smov (!%p238_p2), 8  }
   0x7   : > { %s1844_s12 = smov (!%p238_p2), 12   ;;  %s1845_s13 = smov (!%p238_p2), 16  }
   0x8   : > { %s1846_s14 = smov (!%p238_p2), 20   ;;  %s1847_s15 = smov (!%p238_p2), 24  }
   0x9   : > { %s1848_s16 = smov (!%p238_p2), 28   ;;  %s1849_s19 = smov (!%p238_p2), 32  }
   0xa   : > { %s1850_s26 = smov (!%p238_p2), 48   ;;  %s1851_s27 = smov (!%p238_p2), 56  }
   0xb   : > { %vm279_vm0 = vcmask 31744   ;;  %vm281_vm1 = vcmask 24576   ;;  %v1841_v0 = vmov 0.0   ;;  %s2669_s25 = smov (!%p1906_p3, %s1710_s25), 1  ;;  %v2056_v1 = vld [vmem:[%s2660_s1] ss:$0 sm:$0xff] }
   0xc   : > { %317 = vst.msk [vmem:[#allocation2 + $0x120] sm:$0xff] %vm279_vm0, %v1841_v0  ;;  %283 = vst.msk [vmem:[#allocation2 + $0x10] sm:$0xff] %vm279_vm0, %v1841_v0  ;;  %1787 = vmatprep.subr.bf16.mxu1 %v1841_v0  ;;  %s1760_s29 = sshll.u32 %s2669_s25, 8  ;;  %s1852_s28 = smov 64  }
   0xd   : > { %318 = vst.msk [vmem:[#allocation2 + $0x128] sm:$0x1] %vm281_vm1, %v1841_v0  ;;  %284 = vst.msk [vmem:[#allocation2 + $0x18] sm:$0x1] %vm281_vm1, %v1841_v0  ;;  %s2062_s9 = scalar_lea.vmem %s2659_s0, %s1760_s29  ;;  %s1717_s23 = sshll.u32 %s2669_s25, 3 }
   0xe   : > { %285 = vst.msk [vmem:[#allocation2 + $0x20] sm:$0xff] %vm279_vm0, %v1841_v0  ;;  %287 = vst.msk [vmem:[#allocation2 + $0x30] sm:$0xff] %vm279_vm0, %v1841_v0  ;;  %v1728_v2 = vld [vmem:[%s2062_s9 + $0x88] sm:$0xff]  ;;  %v1729_v3 = vld [vmem:[%s2062_s9 + $0x90] sm:$0xff] }
   0xf   : > { %286 = vst.msk [vmem:[#allocation2 + $0x28] sm:$0x1] %vm281_vm1, %v1841_v0  ;;  %288 = vst.msk [vmem:[#allocation2 + $0x38] sm:$0x1] %vm281_vm1, %v1841_v0  ;;  %v1727_v4 = vld [vmem:[%s2062_s9 + $0x80] sm:$0xff]  ;;  %vm452_vm2 = vcmp.gt.f32.partialorder %v1728_v2, 0.0  ;;  %v460_v5 = vmul.f32 %v1728_v2, %v2056_v1  ;;  %v461_v6 = vmul.f32 %v1729_v3, %v2056_v1 }
  0x10   : > { %289 = vst.msk [vmem:[#allocation2 + $0x40] sm:$0xff] %vm279_vm0, %v1841_v0  ;;  %291 = vst.msk [vmem:[#allocation2 + $0x50] sm:$0xff] %vm279_vm0, %v1841_v0  ;;  %vm453_vm3 = vcmp.gt.f32.partialorder %v1729_v3, 0.0  ;;  %v1735_v7 = vld [vmem:[%s2062_s9 + $0xc0] sm:$0xff]  ;;  %v1737_v8 = vld [vmem:[%s2062_s9 + $0xd0] sm:$0xff]  ;;  %vm451_vm4 = vcmp.gt.f32.partialorder %v1727_v4, 0.0  ;;  %v459_v11 = vmul.f32 %v1727_v4, %v2056_v1 }
  0x11   : > { %290 = vst.msk [vmem:[#allocation2 + $0x48] sm:$0x1] %vm281_vm1, %v1841_v0  ;;  %292 = vst.msk [vmem:[#allocation2 + $0x58] sm:$0x1] %vm281_vm1, %v1841_v0  ;;  %v1736_v9 = vld [vmem:[%s2062_s9 + $0xc8] sm:$0xff]  ;;  %vm493_vm5 = vcmp.gt.f32.partialorder %v1735_v7, 0.0  ;;  %v501_v12 = vmul.f32 %v1735_v7, %v2056_v1  ;;  %v468_v14 = vsel %vm452_vm2, %v1728_v2, %v460_v5  ;;  %v469_v15 = vsel %vm453_vm3, %v1729_v3, %v461_v6 }
  0x12   : > { %293 = vst.msk [vmem:[#allocation2 + $0x60] sm:$0xff] %vm279_vm0, %v1841_v0  ;;  %295 = vst.msk [vmem:[#allocation2 + $0x70] sm:$0xff] %vm279_vm0, %v1841_v0  ;;  %v1720_v13 = vld [vmem:[%s2062_s9 + $0x48] sm:$0xff]  ;;  %vm495_vm6 = vcmp.gt.f32.partialorder %v1737_v8, 0.0  ;;  %v503_v16 = vmul.f32 %v1737_v8, %v2056_v1  ;;  %v1719_v17 = vld [vmem:[%s2062_s9 + $0x40] sm:$0xff]  ;;  %v467_v20 = vsel %vm451_vm4, %v1727_v4, %v459_v11  ;;  %vm494_vm7 = vcmp.gt.f32.partialorder %v1736_v9, 0.0 }
  0x13   : > { %294 = vst.msk [vmem:[#allocation2 + $0x68] sm:$0x1] %vm281_vm1, %v1841_v0  ;;  %296 = vst.msk [vmem:[#allocation2 + $0x78] sm:$0x1] %vm281_vm1, %v1841_v0  ;;  %v1722_v18 = vld [vmem:[%s2062_s9 + $0x58] sm:$0xff]  ;;  %v509_v21 = vsel %vm493_vm5, %v1735_v7, %v501_v12  ;;  %v502_v22 = vmul.f32 %v1736_v9, %v2056_v1  ;;  %v1721_v23 = vld [vmem:[%s2062_s9 + $0x50] sm:$0xff]  ;;  %v418_v26 = vmul.f32 %v1720_v13, %v2056_v1 }
  0x14   : > { %297 = vst.msk [vmem:[#allocation2 + $0x80] sm:$0xff] %vm279_vm0, %v1841_v0  ;;  %301 = vst.msk [vmem:[#allocation2 + $0xa0] sm:$0xff] %vm279_vm0, %v1841_v0  ;;  %v544_v10 = vld [vmem:[#allocation2 + $0x121] sm:$0xff]  ;;  %v511_v25 = vsel %vm495_vm6, %v1737_v8, %v503_v16  ;;  %vm410_vm8 = vcmp.gt.f32.partialorder %v1720_v13, 0.0  ;;  %vm409_vm9 = vcmp.gt.f32.partialorder %v1719_v17, 0.0  ;;  %v417_v29 = vmul.f32 %v1719_v17, %v2056_v1  ;;  %v356_v31 = vld [vmem:[%s2062_s9 + $0x18] sm:$0xff] }
  0x15   : > { %298 = vst.msk [vmem:[#allocation2 + $0x88] sm:$0x1] %vm281_vm1, %v1841_v0  ;;  %302 = vst.msk [vmem:[#allocation2 + $0xa8] sm:$0x1] %vm281_vm1, %v1841_v0  ;;  %560 = vrot.lane.b32.xlu0 %v544_v10, %s1842_s10  ;;  %v354_v24 = vld [vmem:[%s2062_s9 + $0x8] sm:$0xff]  ;;  %v353_v27 = vld [vmem:[%s2062_s9] sm:$0xff]  ;;  %v510_v28 = vsel %vm494_vm7, %v1736_v9, %v502_v22  ;;  %v420_v30 = vmul.f32 %v1722_v18, %v2056_v1  ;;  %v426_v32 = vsel %vm410_vm8, %v1720_v13, %v418_v26 }
  0x16   : > { %303 = vst.msk [vmem:[#allocation2 + $0xb0] sm:$0xff] %vm279_vm0, %v1841_v0  ;;  %305 = vst.msk [vmem:[#allocation2 + $0xc0] sm:$0xff] %vm279_vm0, %v1841_v0  ;;  %vm412_vm10 = vcmp.gt.f32.partialorder %v1722_v18, 0.0  ;;  %vm411_vm11 = vcmp.gt.f32.partialorder %v1721_v23, 0.0  ;;  %v419_v33 = vmul.f32 %v1721_v23, %v2056_v1  ;;  %vm362_vm12 = vcmp.gt.f32.partialorder %v354_v24, 0.0  ;;  %v355_v34 = vld [vmem:[%s2062_s9 + $0x10] sm:$0xff] }
  0x17   : > { %304 = vst.msk [vmem:[#allocation2 + $0xb8] sm:$0x1] %vm281_vm1, %v1841_v0  ;;  %306 = vst.msk [vmem:[#allocation2 + $0xc8] sm:$0x1] %vm281_vm1, %v1841_v0  ;;  %v1738_v35 = vld [vmem:[%s2062_s9 + $0xd8] sm:$0xff]  ;;  %v425_v36 = vsel %vm409_vm9, %v1719_v17, %v417_v29  ;;  %v428_v37 = vsel %vm412_vm10, %v1722_v18, %v420_v30  ;;  %v376_v38 = vmul.f32 %v2056_v1, %v354_v24  ;;  %vm361_vm13 = vcmp.gt.f32.partialorder %v353_v27, 0.0 }
  0x18   : > { %307 = vst.msk [vmem:[#allocation2 + $0xd0] sm:$0xff] %vm279_vm0, %v1841_v0  ;;  %309 = vst.msk [vmem:[#allocation2 + $0xe0] sm:$0xff] %vm279_vm0, %v1841_v0  ;;  %v1730_v39 = vld [vmem:[%s2062_s9 + $0x98] sm:$0xff]  ;;  %v427_v40 = vsel %vm411_vm11, %v1721_v23, %v419_v33  ;;  %v375_v41 = vmul.f32 %v2056_v1, %v353_v27  ;;  %vm364_vm14 = vcmp.gt.f32.partialorder %v356_v31, 0.0  ;;  %v378_v42 = vmul.f32 %v2056_v1, %v356_v31  ;;  %v1731_v43 = vld [vmem:[%s2062_s9 + $0xa0] sm:$0xff] }
  0x19   : > { %308 = vst.msk [vmem:[#allocation2 + $0xd8] sm:$0x1] %vm281_vm1, %v1841_v0  ;;  %310 = vst.msk [vmem:[#allocation2 + $0xe8] sm:$0x1] %vm281_vm1, %v1841_v0  ;;  %v1733_v44 = vld [vmem:[%s2062_s9 + $0xb0] sm:$0xff]  ;;  %v384_v45 = vsel %vm362_vm12, %v354_v24, %v376_v38  ;;  %vm363_vm15 = vcmp.gt.f32.partialorder %v355_v34, 0.0  ;;  %v377_v46 = vmul.f32 %v2056_v1, %v355_v34  ;;  %v504_v53 = vmul.f32 %v1738_v35, %v2056_v1 }
  0x1a   : > { %311 = vst.msk [vmem:[#allocation2 + $0xf0] sm:$0xff] %vm279_vm0, %v1841_v0  ;;  %313 = vst.msk [vmem:[#allocation2 + $0x100] sm:$0xff] %vm279_vm0, %v1841_v0  ;;  %v1732_v47 = vld [vmem:[%s2062_s9 + $0xa8] sm:$0xff]  ;;  %v1739_v48 = vld [vmem:[%s2062_s9 + $0xe0] sm:$0xff]  ;;  %v383_v51 = vsel %vm361_vm13, %v353_v27, %v375_v41  ;;  %v386_v52 = vsel %vm364_vm14, %v356_v31, %v378_v42  ;;  %vm454_vm2 = vcmp.gt.f32.partialorder %v1730_v39, 0.0  ;;  %v462_v59 = vmul.f32 %v1730_v39, %v2056_v1 }
  0x1b   : > { %312 = vst.msk [vmem:[#allocation2 + $0xf8] sm:$0x1] %vm281_vm1, %v1841_v0  ;;  %314 = vst.msk [vmem:[#allocation2 + $0x108] sm:$0x1] %vm281_vm1, %v1841_v0  ;;  %v1741_v49 = vld [vmem:[%s2062_s9 + $0xf0] sm:$0xff]  ;;  %v1740_v54 = vld [vmem:[%s2062_s9 + $0xe8] sm:$0xff]  ;;  %v385_v57 = vsel %vm363_vm15, %v355_v34, %v377_v46  ;;  %v463_v60 = vmul.f32 %v1731_v43, %v2056_v1  ;;  %v465_v3 = vmul.f32 %v1733_v44, %v2056_v1 }
  0x1c   : > { %315 = vst.msk [vmem:[#allocation2 + $0x110] sm:$0xff] %vm279_vm0, %v1841_v0  ;;  %319 = vst.msk [vmem:[#allocation2 + $0x130] sm:$0xff] %vm279_vm0, %v1841_v0  ;;  %vm455_vm3 = vcmp.gt.f32.partialorder %v1731_v43, 0.0  ;;  %v1724_v61 = vld [vmem:[%s2062_s9 + $0x68] sm:$0xff]  ;;  %vm457_vm4 = vcmp.gt.f32.partialorder %v1733_v44, 0.0  ;;  %vm456_vm5 = vcmp.gt.f32.partialorder %v1732_v47, 0.0  ;;  %v470_v7 = vsel %vm454_vm2, %v1730_v39, %v462_v59 }
  0x1d   : > { %316 = vst.msk [vmem:[#allocation2 + $0x118] sm:$0x1] %vm281_vm1, %v1841_v0  ;;  %320 = vst.msk [vmem:[#allocation2 + $0x138] sm:$0x1] %vm281_vm1, %v1841_v0  ;;  %v1723_v4 = vld [vmem:[%s2062_s9 + $0x60] sm:$0xff]  ;;  %v471_v8 = vsel %vm455_vm3, %v1731_v43, %v463_v60  ;;  %v464_v9 = vmul.f32 %v1732_v47, %v2056_v1  ;;  %vm497_vm6 = vcmp.gt.f32.partialorder %v1739_v48, 0.0  ;;  %v473_v10 = vsel %vm457_vm4, %v1733_v44, %v465_v3 }
  0x1e   : > { %321 = vst.msk [vmem:[#allocation2 + $0x140] sm:$0xff] %vm279_vm0, %v1841_v0  ;;  %323 = vst.msk [vmem:[#allocation2 + $0x150] sm:$0xff] %vm279_vm0, %v1841_v0  ;;  %v505_v11 = vmul.f32 %v1739_v48, %v2056_v1  ;;  %vm499_vm7 = vcmp.gt.f32.partialorder %v1741_v49, 0.0  ;;  %v507_v12 = vmul.f32 %v1741_v49, %v2056_v1  ;;  %v1726_v13 = vld [vmem:[%s2062_s9 + $0x78] sm:$0xff]  ;;  %vm498_vm8 = vcmp.gt.f32.partialorder %v1740_v54, 0.0  ;;  %v1725_v16 = vld [vmem:[%s2062_s9 + $0x70] sm:$0xff] }
  0x1f   : > { %322 = vst.msk [vmem:[#allocation2 + $0x148] sm:$0x1] %vm281_vm1, %v1841_v0  ;;  %324 = vst.msk [vmem:[#allocation2 + $0x158] sm:$0x1] %vm281_vm1, %v1841_v0  ;;  %vm414_vm9 = vcmp.gt.f32.partialorder %v1724_v61, 0.0  ;;  %v358_v17 = vld [vmem:[%s2062_s9 + $0x28] sm:$0xff]  ;;  %v421_v26 = vmul.f32 %v1723_v4, %v2056_v1  ;;  %v424_v27 = vmul.f32 %v1726_v13, %v2056_v1  ;;  %v423_v29 = vmul.f32 %v1725_v16, %v2056_v1 }
  0x20   : > { %325 = vst.msk [vmem:[#allocation2 + $0x160] sm:$0xff] %vm279_vm0, %v1841_v0  ;;  %327 = vst.msk [vmem:[#allocation2 + $0x170] sm:$0xff] %vm279_vm0, %v1841_v0  ;;  %vm413_vm10 = vcmp.gt.f32.partialorder %v1723_v4, 0.0  ;;  %v357_v22 = vld [vmem:[%s2062_s9 + $0x20] sm:$0xff]  ;;  %v360_v23 = vld [vmem:[%s2062_s9 + $0x38] sm:$0xff]  ;;  %vm416_vm11 = vcmp.gt.f32.partialorder %v1726_v13, 0.0  ;;  %v380_v34 = vmul.f32 %v2056_v1, %v358_v17 }
  0x21   : > { %326 = vst.msk [vmem:[#allocation2 + $0x168] sm:$0x1] %vm281_vm1, %v1841_v0  ;;  %328 = vst.msk [vmem:[#allocation2 + $0x178] sm:$0x1] %vm281_vm1, %v1841_v0  ;;  %vm415_vm12 = vcmp.gt.f32.partialorder %v1725_v16, 0.0  ;;  %vm366_vm13 = vcmp.gt.f32.partialorder %v358_v17, 0.0  ;;  %v432_v33 = vsel %vm416_vm11, %v1726_v13, %v424_v27  ;;  %v379_v39 = vmul.f32 %v2056_v1, %v357_v22 }
  0x22   : > { %329 = vst.msk [vmem:[#allocation2 + $0x180] sm:$0xff] %vm279_vm0, %v1841_v0  ;;  %331 = vst.msk [vmem:[#allocation2 + $0x190] sm:$0xff] %vm279_vm0, %v1841_v0  ;;  %v359_v30 = vld [vmem:[%s2062_s9 + $0x30] sm:$0xff]  ;;  %v1742_v31 = vld [vmem:[%s2062_s9 + $0xf8] sm:$0xff]  ;;  %vm365_vm14 = vcmp.gt.f32.partialorder %v357_v22, 0.0  ;;  %v431_v38 = vsel %vm415_vm12, %v1725_v16, %v423_v29  ;;  %vm368_vm15 = vcmp.gt.f32.partialorder %v360_v23, 0.0  ;;  %v388_v42 = vsel %vm366_vm13, %v358_v17, %v380_v34 }
  0x23   : > { %330 = vst.msk [vmem:[#allocation2 + $0x188] sm:$0x1] %vm281_vm1, %v1841_v0  ;;  %332 = vst.msk [vmem:[#allocation2 + $0x198] sm:$0x1] %vm281_vm1, %v1841_v0  ;;  %v381_v43 = vmul.f32 %v2056_v1, %v359_v30  ;;  %vm500_vm2 = vcmp.gt.f32.partialorder %v1742_v31, 0.0  ;;  %v387_v44 = vsel %vm365_vm14, %v357_v22, %v379_v39  ;;  %v508_v46 = vmul.f32 %v1742_v31, %v2056_v1 }
  0x24   : > { %333 = vst.msk [vmem:[#allocation2 + $0x1a0] sm:$0xff] %vm279_vm0, %v1841_v0  ;;  %335 = vst.msk [vmem:[#allocation2 + $0x1b0] sm:$0xff] %vm279_vm0, %v1841_v0  ;;  %vm584_vm4 = vcmask 64544   ;;  %vm927_vm11 = vcmask 294144   ;;  %vm975_vm12 = vcmask 293888   ;;  %vm1088_vm13 = vcmask 64512  }
  0x25   : > { %334 = vst.msk [vmem:[#allocation2 + $0x1a8] sm:$0x1] %vm281_vm1, %v1841_v0  ;;  %336 = vst.msk [vmem:[#allocation2 + $0x1b8] sm:$0x1] %vm281_vm1, %v1841_v0  ;;  %vm1090_vm14 = vcmask 58368  }
  0x26   : > { %337 = vst.msk [vmem:[#allocation2 + $0x1c0] sm:$0xff] %vm279_vm0, %v1841_v0  ;;  %339 = vst.msk [vmem:[#allocation2 + $0x1d0] sm:$0xff] %vm279_vm0, %v1841_v0 }
  0x27   : > { %338 = vst.msk [vmem:[#allocation2 + $0x1c8] sm:$0x1] %vm281_vm1, %v1841_v0  ;;  %340 = vst.msk [vmem:[#allocation2 + $0x1d8] sm:$0x1] %vm281_vm1, %v1841_v0 }
  0x28   : > { %341 = vst.msk [vmem:[#allocation2 + $0x1e0] sm:$0xff] %vm279_vm0, %v1841_v0  ;;  %343 = vst.msk [vmem:[#allocation2 + $0x1f0] sm:$0xff] %vm279_vm0, %v1841_v0 }
  0x29   : > { %342 = vst.msk [vmem:[#allocation2 + $0x1e8] sm:$0x1] %vm281_vm1, %v1841_v0  ;;  %344 = vst.msk [vmem:[#allocation2 + $0x1f8] sm:$0x1] %vm281_vm1, %v1841_v0 }
  0x2a   : > { %345 = vst.msk [vmem:[#allocation2 + $0x200] sm:$0xff] %vm279_vm0, %v1841_v0  ;;  %347 = vst.msk [vmem:[#allocation2 + $0x210] sm:$0xff] %vm279_vm0, %v1841_v0 }
  0x2b   : > { %346 = vst.msk [vmem:[#allocation2 + $0x208] sm:$0x1] %vm281_vm1, %v1841_v0  ;;  %348 = vst.msk [vmem:[#allocation2 + $0x218] sm:$0x1] %vm281_vm1, %v1841_v0  ;;  %v527_v55 = vld [vmem:[#allocation2 + $0x1b0] sm:$0xff] }
  0x2c   : > { %349 = vst.msk [vmem:[#allocation2 + $0x220] sm:$0xff] %vm279_vm0, %v1841_v0  ;;  %351 = vst.msk [vmem:[#allocation2 + $0x230] sm:$0xff] %vm279_vm0, %v1841_v0  ;;  %v593_v19 = vld [vmem:[#allocation2 + $0x1b1] sm:$0xff] }
  0x2d   : > { %350 = vst.msk [vmem:[#allocation2 + $0x228] sm:$0x1] %vm281_vm1, %v1841_v0  ;;  %352 = vst.msk [vmem:[#allocation2 + $0x238] sm:$0x1] %vm281_vm1, %v1841_v0  ;;  %609 = vrot.lane.b32.xlu0 %v593_v19, %s1843_s11  ;;  %vm496_vm1 = vcmp.gt.f32.partialorder %v1738_v35, 0.0  ;;  %v513_v19 = vsel %vm497_vm6, %v1739_v48, %v505_v11  ;;  %vm682_vm6 = vcmask 130144  }
  0x2e   : > { %477 = vst.msk [vmem:[#allocation2 + $0x141] sm:$0xff] %vm279_vm0, %v468_v14  ;;  %478 = vst.msk [vmem:[#allocation2 + $0x151] sm:$0xff] %vm279_vm0, %v469_v15  ;;  %v512_v63 = vsel %vm496_vm1, %v1738_v35, %v504_v53  ;;  %v472_v14 = vsel %vm456_vm5, %v1732_v47, %v464_v9  ;;  %v506_v15 = vmul.f32 %v1740_v54, %v2056_v1  ;;  %v1734_v35 = vld [vmem:[%s2062_s9 + $0xb8] sm:$0xff]  ;;  %vm367_vm1 = vcmp.gt.f32.partialorder %v359_v30, 0.0 }
  0x2f   : > { %476 = vst.msk [vmem:[#allocation2 + $0x131] sm:$0xff] %vm279_vm0, %v467_v20  ;;  %518 = vst.msk [vmem:[#allocation2 + $0x1c1] sm:$0xff] %vm279_vm0, %v509_v21  ;;  %v515_v20 = vsel %vm499_vm7, %v1741_v49, %v507_v12  ;;  %v422_v21 = vmul.f32 %v1724_v61, %v2056_v1  ;;  %vm458_vm3 = vcmp.gt.f32.partialorder %v1734_v35, 0.0  ;;  %v389_v47 = vsel %vm367_vm1, %v359_v30, %v381_v43 }
  0x30   : > { %520 = vst.msk [vmem:[#allocation2 + $0x1e1] sm:$0xff] %vm279_vm0, %v511_v25  ;;  %519 = vst.msk [vmem:[#allocation2 + $0x1d1] sm:$0xff] %vm279_vm0, %v510_v28  ;;  %v514_v25 = vsel %vm498_vm8, %v1740_v54, %v506_v15  ;;  %v466_v48 = vmul.f32 %v1734_v35, %v2056_v1  ;;  %vm633_vm5 = vcmask 97344   ;;  %vm731_vm7 = vcmask 162944  }
  0x31   : > { %435 = vst.msk [vmem:[#allocation2 + $0xb1] sm:$0xff] %vm279_vm0, %v426_v32  ;;  %434 = vst.msk [vmem:[#allocation2 + $0xa1] sm:$0xff] %vm279_vm0, %v425_v36  ;;  %v430_v28 = vsel %vm414_vm9, %v1724_v61, %v422_v21  ;;  %v429_v32 = vsel %vm413_vm10, %v1723_v4, %v421_v26  ;;  %vm780_vm8 = vcmask 195744   ;;  %vm829_vm9 = vcmask 228544  }
  0x32   : > { %437 = vst.msk [vmem:[#allocation2 + $0xd1] sm:$0xff] %vm279_vm0, %v428_v37  ;;  %436 = vst.msk [vmem:[#allocation2 + $0xc1] sm:$0xff] %vm279_vm0, %v427_v40  ;;  %v382_v40 = vmul.f32 %v2056_v1, %v360_v23  ;;  %vm878_vm10 = vcmask 261344   ;;  %vm1224_vm1 = vcmask 195712  }
  0x33   : > { %393 = vst.msk [vmem:[#allocation2 + $0x21] sm:$0xff] %vm279_vm0, %v384_v45  ;;  %392 = vst.msk [vmem:[#allocation2 + $0x11] sm:$0xff] %vm279_vm0, %v383_v51 }
  0x34   : > { %395 = vst.msk [vmem:[#allocation2 + $0x41] sm:$0xff] %vm279_vm0, %v386_v52  ;;  %535 = vst.msk [vmem:[#allocation3] sm:$0xff] %vm279_vm0, %v527_v55  ;;  %v390_v45 = vsel %vm368_vm15, %v360_v23, %v382_v40  ;;  %v516_v52 = vsel %vm500_vm2, %v1742_v31, %v508_v46  ;;  %vm1175_vm15 = vcmask 130112  }
  0x35   : > { %v2114_v50 = vld [vmem:[#allocation2 + $0x141] sm:$0xff]  ;;  %v2133_v62 = vld [vmem:[#allocation2 + $0x151] sm:$0xff]  ;;  %394 = vst.msk [vmem:[#allocation2 + $0x31] sm:$0xff] %vm279_vm0, %v385_v57  ;;  %521 = vst.msk [vmem:[#allocation2 + $0x1f1] sm:$0xff] %vm279_vm0, %v512_v63  ;;  %v474_v57 = vsel %vm458_vm3, %v1734_v35, %v466_v48 }
  0x36   : > { %564 = vrot.lane.b32.xlu1 %v2114_v50, %s1842_s10  ;;  %v2122_v56 = vld [vmem:[#allocation2 + $0x131] sm:$0xff]  ;;  %v2127_v58 = vld [vmem:[#allocation2 + $0x1c0] sm:$0xff]  ;;  %479 = vst.msk [vmem:[#allocation2 + $0x161] sm:$0xff] %vm279_vm0, %v470_v7  ;;  %480 = vst.msk [vmem:[#allocation2 + $0x171] sm:$0xff] %vm279_vm0, %v471_v8 }
  0x37   : > { %562 = vrot.lane.b32.xlu0 %v2122_v56, %s1842_s10  ;;  %v2139_v2 = vld [vmem:[#allocation2 + $0x1e0] sm:$0xff]  ;;  %536 = vst.msk [vmem:[#allocation3 + $0x8] sm:$0xff] %vm279_vm0, %v2127_v58  ;;  %v2145_v5 = vld [vmem:[#allocation2 + $0x1d1] sm:$0xff]  ;;  %482 = vst.msk [vmem:[#allocation2 + $0x191] sm:$0xff] %vm279_vm0, %v473_v10 }
  0x38   : > { %v2147_v6 = vld [vmem:[#allocation2 + $0x1d0] sm:$0xff]  ;;  %538 = vst.msk [vmem:[#allocation3 + $0x18] sm:$0xff] %vm279_vm0, %v2139_v2  ;;  %v2169_v18 = vld [vmem:[#allocation2 + $0x1c1] sm:$0xff]  ;;  %481 = vst.msk [vmem:[#allocation2 + $0x181] sm:$0xff] %vm279_vm0, %v472_v14 }
  0x39   : > { %537 = vst.msk [vmem:[#allocation3 + $0x10] sm:$0xff] %vm279_vm0, %v2147_v6  ;;  %v642_v24 = vld [vmem:[#allocation2 + $0xa0] sm:$0xff]  ;;  %522 = vst.msk [vmem:[#allocation2 + $0x201] sm:$0xff] %vm279_vm0, %v513_v19  ;;  %v643_v49 = vld [vmem:[#allocation2 + $0xb0] sm:$0xff] }
  0x3a   : > { %566 = vrot.lane.b32.xlu1 %v2133_v62, %s1842_s10  ;;  %524 = vst.msk [vmem:[#allocation2 + $0x221] sm:$0xff] %vm279_vm0, %v515_v20  ;;  %523 = vst.msk [vmem:[#allocation2 + $0x211] sm:$0xff] %vm279_vm0, %v514_v25  ;;  %v2195_v36 = vld [vmem:[#allocation2 + $0x1e1] sm:$0xff]  ;;  %v691_v53 = vld [vmem:[#allocation2 + $0x11] sm:$0xff] }
  0x3b   : > { %613 = vrot.lane.b32.xlu0 %v2145_v5, %s1843_s11  ;;  %439 = vst.msk [vmem:[#allocation2 + $0xf1] sm:$0xff] %vm279_vm0, %v430_v28  ;;  %438 = vst.msk [vmem:[#allocation2 + $0xe1] sm:$0xff] %vm279_vm0, %v429_v32  ;;  %v644_v41 = vld [vmem:[#allocation2 + $0xc0] sm:$0xff]  ;;  %v645_v1 = vld [vmem:[#allocation2 + $0xd0] sm:$0xff] }
  0x3c   : > { %v2198_v37 = vld [vmem:[#allocation2 + $0x1f0] sm:$0xff]  ;;  %441 = vst.msk [vmem:[#allocation2 + $0x111] sm:$0xff] %vm279_vm0, %v432_v33  ;;  %440 = vst.msk [vmem:[#allocation2 + $0x101] sm:$0xff] %vm279_vm0, %v431_v38  ;;  %v692_v60 = vld [vmem:[#allocation2 + $0x21] sm:$0xff] }
  0x3d   : > { %539 = vst.msk [vmem:[#allocation3 + $0x20] sm:$0xff] %vm279_vm0, %v2198_v37  ;;  %397 = vst.msk [vmem:[#allocation2 + $0x61] sm:$0xff] %vm279_vm0, %v388_v42  ;;  %v693_v59 = vld [vmem:[#allocation2 + $0x31] sm:$0xff]  ;;  %v740_v61 = vld [vmem:[#allocation2 + $0xa1] sm:$0xff] }
  0x3e   : > { %611 = vrot.lane.b32.xlu1 %v2169_v18, %s1843_s11  ;;  %396 = vst.msk [vmem:[#allocation2 + $0x51] sm:$0xff] %vm279_vm0, %v387_v44  ;;  %399 = vst.msk [vmem:[#allocation2 + $0x81] sm:$0xff] %vm279_vm0, %v390_v45  ;;  %v694_v63 = vld [vmem:[#allocation2 + $0x41] sm:$0xff]  ;;  %v741_v4 = vld [vmem:[#allocation2 + $0xb1] sm:$0xff] }
  0x3f   : > { %658 = vrot.lane.b32.xlu0 %v642_v24, %s1844_s12  ;;  %398 = vst.msk [vmem:[#allocation2 + $0x71] sm:$0xff] %vm279_vm0, %v389_v47  ;;  %525 = vst.msk [vmem:[#allocation2 + $0x231] sm:$0xff] %vm279_vm0, %v516_v52  ;;  %v742_v3 = vld [vmem:[#allocation2 + $0xc1] sm:$0xff]  ;;  %v743_v7 = vld [vmem:[#allocation2 + $0xd1] sm:$0xff] }
  0x40   : > { %v2220_v51 = vld [vmem:[#allocation2 + $0x200] sm:$0xff]  ;;  %483 = vst.msk [vmem:[#allocation2 + $0x1a1] sm:$0xff] %vm279_vm0, %v474_v57  ;;  %v890_v9 = vld [vmem:[#allocation2 + $0x1f1] sm:$0xff] }
  0x41   : > { %v2223_v54 = vld [vmem:[#allocation2 + $0x210] sm:$0xff]  ;;  %v2226_v55 = vld [vmem:[#allocation2 + $0x220] sm:$0xff]  ;;  %540 = vst.msk [vmem:[#allocation3 + $0x28] sm:$0xff] %vm279_vm0, %v2220_v51 }
  0x42   : > { %615 = vrot.lane.b32.xlu1 %v2195_v36, %s1843_s11  ;;  %542 = vst.msk [vmem:[#allocation3 + $0x38] sm:$0xff] %vm279_vm0, %v2226_v55  ;;  %541 = vst.msk [vmem:[#allocation3 + $0x30] sm:$0xff] %vm279_vm0, %v2223_v54  ;;  %vm988_vm0 = vcmask 1041408   ;;  %v550_v8 = vld [vmem:[#allocation2 + $0x181] sm:$0xff]  ;;  %v551_v10 = vld [vmem:[#allocation2 + $0x191] sm:$0xff] }
  0x43   : > { %662 = vrot.lane.b32.xlu0 %v644_v41, %s1844_s12  ;;  %v599_v11 = vld [vmem:[#allocation2 + $0x211] sm:$0xff]  ;;  %v646_v12 = vld [vmem:[#allocation2 + $0xe0] sm:$0xff]  ;;  %1096 = vst.msk [vmem:[#allocation4 + $0x30] sm:$0xff] %vm1088_vm13, %v1841_v0  ;;  %1089 = vst.msk [vmem:[#allocation4] sm:$0xff] %vm1088_vm13, %v1841_v0 }
  0x44   : > { %v600_v13 = vld [vmem:[#allocation2 + $0x221] sm:$0xff]  ;;  %v647_v15 = vld [vmem:[#allocation2 + $0xf0] sm:$0xff]  ;;  %1092 = vst.msk [vmem:[#allocation4 + $0x10] sm:$0xff] %vm1088_vm13, %v1841_v0  ;;  %1094 = vst.msk [vmem:[#allocation4 + $0x20] sm:$0xff] %vm1088_vm13, %v1841_v0 }
  0x45   : > { %v648_v14 = vld [vmem:[#allocation2 + $0x100] sm:$0xff]  ;;  %v695_v16 = vld [vmem:[#allocation2 + $0x51] sm:$0xff]  ;;  %1098 = vst.msk [vmem:[#allocation4 + $0x40] sm:$0xff] %vm1088_vm13, %v1841_v0  ;;  %1100 = vst.msk [vmem:[#allocation4 + $0x50] sm:$0xff] %vm1088_vm13, %v1841_v0 }
  0x46   : > { %660 = vrot.lane.b32.xlu1 %v643_v49, %s1844_s12  ;;  %v649_v17 = vld [vmem:[#allocation2 + $0x110] sm:$0xff]  ;;  %v696_v19 = vld [vmem:[#allocation2 + $0x61] sm:$0xff]  ;;  %1102 = vst.msk [vmem:[#allocation4 + $0x60] sm:$0xff] %vm1088_vm13, %v1841_v0  ;;  %1104 = vst.msk [vmem:[#allocation4 + $0x70] sm:$0xff] %vm1088_vm13, %v1841_v0 }
  0x47   : > { %707 = vrot.lane.b32.xlu0 %v691_v53, %s1845_s13  ;;  %v744_v20 = vld [vmem:[#allocation2 + $0xe1] sm:$0xff]  ;;  %v745_v23 = vld [vmem:[#allocation2 + $0xf1] sm:$0xff]  ;;  %1106 = vst.msk [vmem:[#allocation4 + $0x80] sm:$0xff] %vm1088_vm13, %v1841_v0  ;;  %1108 = vst.msk [vmem:[#allocation4 + $0x90] sm:$0xff] %vm1088_vm13, %v1841_v0 }
  0x48   : > { %v698_v21 = vld [vmem:[#allocation2 + $0x81] sm:$0xff]  ;;  %v747_v24 = vld [vmem:[#allocation2 + $0x111] sm:$0xff]  ;;  %1097 = vst.msk [vmem:[#allocation4 + $0x38] sm:$0x3] %vm1090_vm14, %v1841_v0  ;;  %1091 = vst.msk [vmem:[#allocation4 + $0x8] sm:$0x3] %vm1090_vm14, %v1841_v0 }
  0x49   : > { %v746_v22 = vld [vmem:[#allocation2 + $0x101] sm:$0xff]  ;;  %v796_v25 = vld [vmem:[#allocation2 + $0x230] sm:$0xff]  ;;  %1093 = vst.msk [vmem:[#allocation4 + $0x18] sm:$0x3] %vm1090_vm14, %v1841_v0  ;;  %1095 = vst.msk [vmem:[#allocation4 + $0x28] sm:$0x3] %vm1090_vm14, %v1841_v0 }
  0x4a   : > { %664 = vrot.lane.b32.xlu1 %v645_v1, %s1844_s12  ;;  %v845_v28 = vld [vmem:[#allocation2 + $0x1a1] sm:$0xff]  ;;  %v894_v33 = vld [vmem:[#allocation2 + $0x231] sm:$0xff]  ;;  %1099 = vst.msk [vmem:[#allocation4 + $0x48] sm:$0x3] %vm1090_vm14, %v1841_v0  ;;  %1101 = vst.msk [vmem:[#allocation4 + $0x58] sm:$0x3] %vm1090_vm14, %v1841_v0 }
  0x4b   : > { %711 = vrot.lane.b32.xlu0 %v693_v59, %s1845_s13  ;;  %1103 = vst.msk [vmem:[#allocation4 + $0x68] sm:$0x3] %vm1090_vm14, %v1841_v0  ;;  %1105 = vst.msk [vmem:[#allocation4 + $0x78] sm:$0x3] %vm1090_vm14, %v1841_v0 }
  0x4c   : > { %1107 = vst.msk [vmem:[#allocation4 + $0x88] sm:$0x3] %vm1090_vm14, %v1841_v0  ;;  %1109 = vst.msk [vmem:[#allocation4 + $0x98] sm:$0x3] %vm1090_vm14, %v1841_v0  ;;  %vm1470_vm14 = vcmask 523712  }
  0x4e   : > { %709 = vrot.lane.b32.xlu1 %v692_v60, %s1845_s13 }
  0x4f   : > { %756 = vrot.lane.b32.xlu0 %v740_v61, %s1846_s14 }
  0x52   : > { %713 = vrot.lane.b32.xlu1 %v694_v63, %s1845_s13 }
  0x53   : > { %760 = vrot.lane.b32.xlu0 %v742_v3, %s1846_s14 }
  0x56   : > { %758 = vrot.lane.b32.xlu1 %v741_v4, %s1846_s14 }
  0x57   : > { %805 = vrot.lane.b32.xlu0 %v2127_v58, %s1847_s15  ;;  %v1825_v58 = vld [vmem:[%s2661_s2 + $0x10] ss:$0 sps:$4 sm:$0x33]  }
  0x58   : > { %1799 = vmatprep.subr.msk.bf16.mxu0 %vm988_vm0, %v1825_v58 }
  0x5a   : > { %762 = vrot.lane.b32.xlu1 %v743_v7, %s1846_s14 }
  0x5b   : > { %809 = vrot.lane.b32.xlu0 %v2139_v2, %s1847_s15  ;;  %v841_v2 = vld [vmem:[#allocation2 + $0x161] sm:$0xff] }
  0x5e   : > { %807 = vrot.lane.b32.xlu1 %v2147_v6, %s1847_s15  ;;  %v549_v6 = vld [vmem:[#allocation2 + $0x171] sm:$0xff] }
  0x5f   : > { %854 = vrot.lane.b32.xlu0 %v2122_v56, %s1848_s16  ;;  %v990_v56 = vsel %vm988_vm0, %v1825_v58, 0 }
  0x60   : > { %1774 = vmatpush3.bf16.msra.mxu0 %v990_v56 }
  0x62   : > { %811 = vrot.lane.b32.xlu1 %v2198_v37, %s1847_s15 }
  0x63   : > { %858 = vrot.lane.b32.xlu0 %v2133_v62, %s1848_s16  ;;  %v1826_v62 = vld [vmem:[%s2661_s2 + $0x8] sm:$0xff]  }
  0x64   : > { %1775 = vmatprep.subr.bf16.mxu0 %v1826_v62 }
  0x65   : > { %1776 = vmatpush3.bf16.msra.mxu0 %v1826_v62 }
  0x66   : > { %856 = vrot.lane.b32.xlu1 %v2114_v50, %s1848_s16  ;;  %v1827_v50 = vld [vmem:[%s2661_s2] sm:$0xff]  }
  0x67   : > { %903 = vrot.lane.b32.xlu0 %v2169_v18, %s1849_s19  ;;  %1777 = vmatprep.subr.bf16.mxu0 %v1827_v50  ;;  %v697_v18 = vld [vmem:[#allocation2 + $0x71] sm:$0xff] }
  0x69   : > { %1778 = vmatpush3.bf16.msra.mxu0 %v1827_v50 }
  0x6a   : > { %860 = vrot.lane.b32.xlu1 %v841_v2, %s1848_s16 }
  0x6b   : > { %568 = vrot.lane.b32.xlu0 %v841_v2, %s1842_s10 }
  0x6e   : > { %905 = vrot.lane.b32.xlu1 %v2145_v5, %s1849_s19  ;;  %v598_v5 = vld [vmem:[#allocation2 + $0x201] sm:$0xff] }
  0x6f   : > { %907 = vrot.lane.b32.xlu0 %v2195_v36, %s1849_s19 }
  0x72   : > { %570 = vrot.lane.b32.xlu1 %v549_v6, %s1842_s10 }
  0x73   : > { %572 = vrot.lane.b32.xlu0 %v550_v8, %s1842_s10 }
  0x76   : > { %909 = vrot.lane.b32.xlu1 %v890_v9, %s1849_s19 }
  0x77   : > { %617 = vrot.lane.b32.xlu0 %v890_v9, %s1843_s11 }
  0x7a   : > { %574 = vrot.lane.b32.xlu1 %v551_v10, %s1842_s10  ;;  %s1853_s10 = smov 40  }
  0x7b   : > { %621 = vrot.lane.b32.xlu0 %v599_v11, %s1843_s11 }
  0x7e   : > { %619 = vrot.lane.b32.xlu1 %v598_v5, %s1843_s11 }
  0x7f   : > { %666 = vrot.lane.b32.xlu0 %v646_v12, %s1844_s12 }
  0x82   : > { %623 = vrot.lane.b32.xlu1 %v600_v13, %s1843_s11 }
  0x83   : > { %670 = vrot.lane.b32.xlu0 %v648_v14, %s1844_s12 }
  0x86   : > { %668 = vrot.lane.b32.xlu1 %v647_v15, %s1844_s12 }
  0x87   : > { %715 = vrot.lane.b32.xlu0 %v695_v16, %s1845_s13  ;;  %v561_v26 = vpop.permute.xlu0 %560 }
  0x88   : > { %585 = vst.msk [vmem:[#allocation3] sm:$0xff] %vm584_vm4, %v561_v26 }
  0x8a   : > { %672 = vrot.lane.b32.xlu1 %v649_v17, %s1844_s12 }
  0x8b   : > { %719 = vrot.lane.b32.xlu0 %v697_v18, %s1845_s13 }
  0x8e   : > { %717 = vrot.lane.b32.xlu1 %v696_v19, %s1845_s13 }
  0x8f   : > { %764 = vrot.lane.b32.xlu0 %v744_v20, %s1846_s14 }
  0x92   : > { %721 = vrot.lane.b32.xlu1 %v698_v21, %s1845_s13 }
  0x93   : > { %768 = vrot.lane.b32.xlu0 %v746_v22, %s1846_s14 }
  0x96   : > { %766 = vrot.lane.b32.xlu1 %v745_v23, %s1846_s14 }
  0x97   : > { %813 = vrot.lane.b32.xlu0 %v2220_v51, %s1847_s15 }
  0x9a   : > { %770 = vrot.lane.b32.xlu1 %v747_v24, %s1846_s14 }
  0x9b   : > { %817 = vrot.lane.b32.xlu0 %v2226_v55, %s1847_s15 }
  0x9e   : > { %815 = vrot.lane.b32.xlu1 %v2223_v54, %s1847_s15 }
  0x9f   : > { %862 = vrot.lane.b32.xlu0 %v549_v6, %s1848_s16  ;;  %v610_v27 = vpop.permute.xlu0 %609 }
  0xa0   : > { %634 = vst.msk [vmem:[#allocation3] sm:$0xff] %vm633_vm5, %v610_v27 }
  0xa2   : > { %819 = vrot.lane.b32.xlu1 %v796_v25, %s1847_s15 }
  0xa3   : > { %866 = vrot.lane.b32.xlu0 %v551_v10, %s1848_s16 }
  0xa6   : > { %864 = vrot.lane.b32.xlu1 %v550_v8, %s1848_s16 }
  0xa7   : > { %911 = vrot.lane.b32.xlu0 %v598_v5, %s1849_s19 }
  0xa8   : > { %v565_v29 = vpop.permute.xlu1 %564 }
  0xa9   : > { %587 = vst.msk [vmem:[#allocation3 + $0x10] sm:$0xff] %vm584_vm4, %v565_v29  ;;  %v563_v30 = vpop.permute.xlu0 %562 }
  0xaa   : > { %868 = vrot.lane.b32.xlu1 %v845_v28, %s1848_s16  ;;  %586 = vst.msk [vmem:[#allocation3 + $0x8] sm:$0xff] %vm584_vm4, %v563_v30 }
  0xab   : > { %915 = vrot.lane.b32.xlu0 %v600_v13, %s1849_s19 }
  0xac   : > { %v567_v31 = vpop.permute.xlu1 %566 }
  0xad   : > { %588 = vst.msk [vmem:[#allocation3 + $0x18] sm:$0xff] %vm584_vm4, %v567_v31  ;;  %v614_v32 = vpop.permute.xlu0 %613 }
  0xae   : > { %913 = vrot.lane.b32.xlu1 %v599_v11, %s1849_s19  ;;  %636 = vst.msk [vmem:[#allocation3 + $0x10] sm:$0xff] %vm633_vm5, %v614_v32 }
  0xb0   : > { %v612_v34 = vpop.permute.xlu1 %611 }
  0xb1   : > { %635 = vst.msk [vmem:[#allocation3 + $0x8] sm:$0xff] %vm633_vm5, %v612_v34  ;;  %v659_v35 = vpop.permute.xlu0 %658 }
  0xb2   : > { %917 = vrot.lane.b32.xlu1 %v894_v33, %s1849_s19  ;;  %683 = vst.msk [vmem:[#allocation3] sm:$0xff] %vm682_vm6, %v659_v35 }
  0xb4   : > { %v616_v36 = vpop.permute.xlu1 %615 }
  0xb5   : > { %637 = vst.msk [vmem:[#allocation3 + $0x18] sm:$0xff] %vm633_vm5, %v616_v36  ;;  %v663_v37 = vpop.permute.xlu0 %662 }
  0xb6   : > { %685 = vst.msk [vmem:[#allocation3 + $0x10] sm:$0xff] %vm682_vm6, %v663_v37 }
  0xb8   : > { %v661_v38 = vpop.permute.xlu1 %660 }
  0xb9   : > { %684 = vst.msk [vmem:[#allocation3 + $0x8] sm:$0xff] %vm682_vm6, %v661_v38  ;;  %v708_v39 = vpop.permute.xlu0 %707 }
  0xba   : > { %732 = vst.msk [vmem:[#allocation3] sm:$0xff] %vm731_vm7, %v708_v39 }
  0xbc   : > { %v665_v40 = vpop.permute.xlu1 %664 }
  0xbd   : > { %686 = vst.msk [vmem:[#allocation3 + $0x18] sm:$0xff] %vm682_vm6, %v665_v40  ;;  %v712_v41 = vpop.permute.xlu0 %711 }
  0xbe   : > { %734 = vst.msk [vmem:[#allocation3 + $0x10] sm:$0xff] %vm731_vm7, %v712_v41  ;;  %v1388_v41 = vld [vmem:[#allocation4 + $0x90] sm:$0xff] }
  0xbf   : > { %1411 = vrot.lane.b32.xlu1 %v1388_v41, %s1850_s26 }
  0xc0   : > { %v710_v42 = vpop.permute.xlu1 %709 }
  0xc1   : > { %733 = vst.msk [vmem:[#allocation3 + $0x8] sm:$0xff] %vm731_vm7, %v710_v42  ;;  %v757_v43 = vpop.permute.xlu0 %756  ;;  %v1437_v42 = vld [vmem:[#allocation4 + $0x91] sm:$0xff] }
  0xc2   : > { %781 = vst.msk [vmem:[#allocation3] sm:$0xff] %vm780_vm8, %v757_v43  ;;  %v1135_v43 = vld [vmem:[#allocation4 + $0x1] sm:$0xff] }
  0xc3   : > { %1460 = vrot.lane.b32.xlu1 %v1437_v42, %s1851_s27  ;;  %1151 = vrot.lane.b32.xlu0 %v1135_v43, %s1843_s11 }
  0xc4   : > { %v714_v44 = vpop.permute.xlu1 %713 }
  0xc5   : > { %735 = vst.msk [vmem:[#allocation3 + $0x18] sm:$0xff] %vm731_vm7, %v714_v44  ;;  %v761_v45 = vpop.permute.xlu0 %760  ;;  %v1486_v44 = vld [vmem:[#allocation4 + $0x92] sm:$0xff] }
  0xc6   : > { %783 = vst.msk [vmem:[#allocation3 + $0x10] sm:$0xff] %vm780_vm8, %v761_v45  ;;  %v1184_v45 = vld [vmem:[#allocation4 + $0x2] sm:$0xff] }
  0xc7   : > { %1509 = vrot.lane.b32.xlu1 %v1486_v44, %s1852_s28  ;;  %1200 = vrot.lane.b32.xlu0 %v1184_v45, %s1845_s13 }
  0xc8   : > { %v759_v46 = vpop.permute.xlu1 %758 }
  0xc9   : > { %782 = vst.msk [vmem:[#allocation3 + $0x8] sm:$0xff] %vm780_vm8, %v759_v46  ;;  %v806_v47 = vpop.permute.xlu0 %805  ;;  %v1119_v46 = vld [vmem:[#allocation4] sm:$0xff] }
  0xca   : > { %830 = vst.msk [vmem:[#allocation3] sm:$0xff] %vm829_vm9, %v806_v47 }
  0xcc   : > { %v763_v48 = vpop.permute.xlu1 %762 }
  0xcd   : > { %784 = vst.msk [vmem:[#allocation3 + $0x18] sm:$0xff] %vm780_vm8, %v763_v48  ;;  %v810_v49 = vpop.permute.xlu0 %809 }
  0xce   : > { %832 = vst.msk [vmem:[#allocation3 + $0x10] sm:$0xff] %vm829_vm9, %v810_v49  ;;  %v2420_v49 = vld [vmem:[%s2662_s3] ss:$0 sm:$0xff] }
  0xd0   : > { %v808_v51 = vpop.permute.xlu1 %807 }
  0xd1   : > { %831 = vst.msk [vmem:[#allocation3 + $0x8] sm:$0xff] %vm829_vm9, %v808_v51  ;;  %v855_v52 = vpop.permute.xlu0 %854 }
  0xd2   : > { %879 = vst.msk [vmem:[#allocation3] sm:$0xff] %vm878_vm10, %v855_v52  ;;  %v2425_v52 = vld [vmem:[%s2663_s4] ss:$0 sm:$0xff] }
  0xd4   : > { %v812_v53 = vpop.permute.xlu1 %811 }
  0xd5   : > { %833 = vst.msk [vmem:[#allocation3 + $0x18] sm:$0xff] %vm829_vm9, %v812_v53  ;;  %v859_v54 = vpop.permute.xlu0 %858 }
  0xd6   : > { %881 = vst.msk [vmem:[#allocation3 + $0x10] sm:$0xff] %vm878_vm10, %v859_v54 }
  0xd8   : > { %v857_v55 = vpop.permute.xlu1 %856 }
  0xd9   : > { %880 = vst.msk [vmem:[#allocation3 + $0x8] sm:$0xff] %vm878_vm10, %v857_v55  ;;  %v904_v57 = vpop.permute.xlu0 %903 }
  0xda   : > { %928 = vst.msk [vmem:[#allocation3] sm:$0xff] %vm927_vm11, %v904_v57 }
  0xdc   : > { %v861_v1 = vpop.permute.xlu1 %860 }
  0xdd   : > { %882 = vst.msk [vmem:[#allocation3 + $0x18] sm:$0xff] %vm878_vm10, %v861_v1  ;;  %v569_v59 = vpop.permute.xlu0 %568 }
  0xde   : > { %589 = vst.msk [vmem:[#allocation3 + $0x20] sm:$0xff] %vm584_vm4, %v569_v59 }
  0xe0   : > { %v906_v60 = vpop.permute.xlu1 %905 }
  0xe1   : > { %929 = vst.msk [vmem:[#allocation3 + $0x8] sm:$0xff] %vm927_vm11, %v906_v60  ;;  %v908_v61 = vpop.permute.xlu0 %907  ;;  %v936_v4 = vld [vmem:[#allocation3] sm:$0xff] }
  0xe2   : > { %930 = vst.msk [vmem:[#allocation3 + $0x10] sm:$0xff] %vm927_vm11, %v908_v61 }
  0xe3   : > { %1127 = vst.msk [vmem:[#allocation3] sm:$0xff] %vm1088_vm13, %v1119_v46 }
  0xe4   : > { %v571_v63 = vpop.permute.xlu1 %570 }
  0xe5   : > { %590 = vst.msk [vmem:[#allocation3 + $0x28] sm:$0xff] %vm584_vm4, %v571_v63  ;;  %v573_v3 = vpop.permute.xlu0 %572 }
  0xe6   : > { %591 = vst.msk [vmem:[#allocation3 + $0x30] sm:$0xff] %vm584_vm4, %v573_v3 }
  0xe8   : > { %v910_v7 = vpop.permute.xlu1 %909  ;;  %v937_v58 = vld [vmem:[#allocation3 + $0x8] sm:$0xff] }
  0xe9   : > { %931 = vst.msk [vmem:[#allocation3 + $0x18] sm:$0xff] %vm927_vm11, %v910_v7  ;;  %v944_v2 = vpack.c.bf16 %v937_v58, %v936_v4  ;;  %v618_v56 = vpop.permute.xlu0 %617  ;;  %v938_v6 = vld [vmem:[#allocation3 + $0x10] sm:$0xff] }
  0xea   : > { %638 = vst.msk [vmem:[#allocation3 + $0x20] sm:$0xff] %vm633_vm5, %v618_v56 }
  0xeb   : > { %1779 = vmatprep.mubr.msk.bf16.mxu0 %vm975_vm12, %v944_v2 }
  0xec   : > { %v575_v62 = vpop.permute.xlu1 %574 }
  0xed   : > { %592 = vst.msk [vmem:[#allocation3 + $0x38] sm:$0xff] %vm584_vm4, %v575_v62  ;;  %v622_v50 = vpop.permute.xlu0 %621 }
  0xee   : > { %640 = vst.msk [vmem:[#allocation3 + $0x30] sm:$0xff] %vm633_vm5, %v622_v50 }
  0xf0   : > { %v620_v8 = vpop.permute.xlu1 %619  ;;  %v939_v9 = vld [vmem:[#allocation3 + $0x18] sm:$0xff] }
  0xf1   : > { %639 = vst.msk [vmem:[#allocation3 + $0x28] sm:$0xff] %vm633_vm5, %v620_v8  ;;  %v945_v10 = vpack.c.bf16 %v939_v9, %v938_v6  ;;  %v667_v11 = vpop.permute.xlu0 %666 }
  0xf2   : > { %687 = vst.msk [vmem:[#allocation3 + $0x20] sm:$0xff] %vm682_vm6, %v667_v11 }
  0xf3   : > { %1780 = vmatmul.mubr.msk.bf16.vlgmr.msra.gmra.mxu0 %vm975_vm12, %v945_v10 }
  0xf4   : > { %v624_v5 = vpop.permute.xlu1 %623 }
  0xf5   : > { %641 = vst.msk [vmem:[#allocation3 + $0x38] sm:$0xff] %vm633_vm5, %v624_v5  ;;  %v671_v12 = vpop.permute.xlu0 %670 }
  0xf6   : > { %689 = vst.msk [vmem:[#allocation3 + $0x30] sm:$0xff] %vm682_vm6, %v671_v12 }
  0xf8   : > { %v669_v13 = vpop.permute.xlu1 %668 }
  0xf9   : > { %688 = vst.msk [vmem:[#allocation3 + $0x28] sm:$0xff] %vm682_vm6, %v669_v13  ;;  %v716_v14 = vpop.permute.xlu0 %715 }
  0xfa   : > { %736 = vst.msk [vmem:[#allocation3 + $0x20] sm:$0xff] %vm731_vm7, %v716_v14 }
  0xfc   : > { %v673_v15 = vpop.permute.xlu1 %672 }
  0xfd   : > { %690 = vst.msk [vmem:[#allocation3 + $0x38] sm:$0xff] %vm682_vm6, %v673_v15  ;;  %v720_v16 = vpop.permute.xlu0 %719 }
  0xfe   : > { %738 = vst.msk [vmem:[#allocation3 + $0x30] sm:$0xff] %vm731_vm7, %v720_v16 }
 0x100   : > { %v718_v17 = vpop.permute.xlu1 %717 }
 0x101   : > { %737 = vst.msk [vmem:[#allocation3 + $0x28] sm:$0xff] %vm731_vm7, %v718_v17  ;;  %v765_v18 = vpop.permute.xlu0 %764 }
 0x102   : > { %785 = vst.msk [vmem:[#allocation3 + $0x20] sm:$0xff] %vm780_vm8, %v765_v18 }
 0x104   : > { %v722_v19 = vpop.permute.xlu1 %721 }
 0x105   : > { %739 = vst.msk [vmem:[#allocation3 + $0x38] sm:$0xff] %vm731_vm7, %v722_v19  ;;  %v769_v20 = vpop.permute.xlu0 %768 }
 0x106   : > { %787 = vst.msk [vmem:[#allocation3 + $0x30] sm:$0xff] %vm780_vm8, %v769_v20 }
 0x108   : > { %v767_v21 = vpop.permute.xlu1 %766 }
 0x109   : > { %786 = vst.msk [vmem:[#allocation3 + $0x28] sm:$0xff] %vm780_vm8, %v767_v21  ;;  %v814_v22 = vpop.permute.xlu0 %813 }
 0x10a   : > { %834 = vst.msk [vmem:[#allocation3 + $0x20] sm:$0xff] %vm829_vm9, %v814_v22 }
 0x10c   : > { %v771_v23 = vpop.permute.xlu1 %770 }
 0x10d   : > { %788 = vst.msk [vmem:[#allocation3 + $0x38] sm:$0xff] %vm780_vm8, %v771_v23  ;;  %v818_v24 = vpop.permute.xlu0 %817 }
 0x10e   : > { %836 = vst.msk [vmem:[#allocation3 + $0x30] sm:$0xff] %vm829_vm9, %v818_v24 }
 0x110   : > { %v816_v25 = vpop.permute.xlu1 %815 }
 0x111   : > { %835 = vst.msk [vmem:[#allocation3 + $0x28] sm:$0xff] %vm829_vm9, %v816_v25  ;;  %v863_v26 = vpop.permute.xlu0 %862 }
 0x112   : > { %883 = vst.msk [vmem:[#allocation3 + $0x20] sm:$0xff] %vm878_vm10, %v863_v26 }
 0x114   : > { %v820_v27 = vpop.permute.xlu1 %819 }
 0x115   : > { %837 = vst.msk [vmem:[#allocation3 + $0x38] sm:$0xff] %vm829_vm9, %v820_v27  ;;  %v867_v28 = vpop.permute.xlu0 %866  ;;  %vm1273_vm9 = vcmask 261312  }
 0x116   : > { %885 = vst.msk [vmem:[#allocation3 + $0x30] sm:$0xff] %vm878_vm10, %v867_v28 }
 0x118   : > { %v865_v29 = vpop.permute.xlu1 %864 }
 0x119   : > { %884 = vst.msk [vmem:[#allocation3 + $0x28] sm:$0xff] %vm878_vm10, %v865_v29  ;;  %v912_v30 = vpop.permute.xlu0 %911 }
 0x11a   : > { %932 = vst.msk [vmem:[#allocation3 + $0x20] sm:$0xff] %vm927_vm11, %v912_v30 }
 0x11c   : > { %v869_v31 = vpop.permute.xlu1 %868 }
 0x11d   : > { %886 = vst.msk [vmem:[#allocation3 + $0x38] sm:$0xff] %vm878_vm10, %v869_v31  ;;  %v916_v32 = vpop.permute.xlu0 %915  ;;  %vm1322_vm10 = vcmask 326912  }
 0x11e   : > { %934 = vst.msk [vmem:[#allocation3 + $0x30] sm:$0xff] %vm927_vm11, %v916_v32 }
 0x120   : > { %v914_v33 = vpop.permute.xlu1 %913 }
 0x121   : > { %933 = vst.msk [vmem:[#allocation3 + $0x28] sm:$0xff] %vm927_vm11, %v914_v33  ;;  %v940_v35 = vld [vmem:[#allocation3 + $0x20] sm:$0xff] }
 0x124   : > { %v918_v34 = vpop.permute.xlu1 %917 }
 0x125   : > { %935 = vst.msk [vmem:[#allocation3 + $0x38] sm:$0xff] %vm927_vm11, %v918_v34  ;;  %v942_v38 = vld [vmem:[#allocation3 + $0x30] sm:$0xff]  ;;  %vm1371_vm11 = vcmask 392512  }
 0x128   : > { %v941_v36 = vld [vmem:[#allocation3 + $0x28] sm:$0xff] }
 0x129   : > { %v946_v37 = vpack.c.bf16 %v941_v36, %v940_v35 }
 0x12b   : > { %1783 = vmatprep.mubr.msk.bf16.mxu0 %vm975_vm12, %v946_v37 }
 0x12c   : > { %v943_v39 = vld [vmem:[#allocation3 + $0x38] sm:$0xff] }
 0x12d   : > { %v947_v40 = vpack.c.bf16 %v943_v39, %v942_v38 }
 0x12f   : > { %1784 = vmatmul.mubr.msk.bf16.gmra.mxu0 %vm975_vm12, %v947_v40  ;;  %vm1854_vm12 = vmmov 0  }
 0x130   : > { %1795 = vmatprep.mubr.msk.bf16.mxu1 %vm1854_vm12, %v1841_v0 }
 0x131   : > { %v2523_v43 = vpop.permute.xlu1 %1411 }
 0x135   : > { %v1152_v47 = vpop.permute.xlu0 %1151  ;;  %v2527_v45 = vpop.permute.xlu1 %1460 }
 0x136   : > { %1176 = vst.msk [vmem:[#allocation3] sm:$0xff] %vm1175_vm15, %v1152_v47 }
 0x139   : > { %v1201_v48 = vpop.permute.xlu0 %1200  ;;  %v2534_v46 = vpop.permute.xlu1 %1509 }
 0x13a   : > { %1225 = vst.msk [vmem:[#allocation3] sm:$0xff] %vm1224_vm1, %v1201_v48 }
 0x1b3   : > { %v1781_v51 = vpop.f32.mrf.mxu0 }
 0x1b4   : > { %v1035_v53 = vadd.f32 %v1781_v51, %v2420_v49 }
 0x1b5   : > { %v1026_v54 = vpop.f32.mrf.mxu0 }
 0x1b6   : > { %vm1059_vm2 = vcmp.gt.f32.partialorder %v1035_v53, 0.0  ;;  %v1074_v55 = vmul.f32 %v2425_v52, %v1035_v53  ;;  %v1027_v57 = vadd.f32 %v2420_v49, %v1026_v54 }
 0x1b7   : > { %v1782_v1 = vpop.f32.mrf.mxu0 }
 0x1b8   : > { %v1082_v59 = vsel %vm1059_vm2, %v1035_v53, %v1074_v55  ;;  %vm1057_vm3 = vcmp.gt.f32.partialorder %v1027_v57, 0.0  ;;  %v1072_v60 = vmul.f32 %v2425_v52, %v1027_v57  ;;  %v1038_v61 = vadd.f32 %v1782_v1, %v2420_v49 }
 0x1b9   : > { %1113 = vst.msk [vmem:[#allocation4 + $0x31] sm:$0xff] %vm1088_vm13, %v1082_v59  ;;  %v1029_v63 = vpop.f32.mrf.mxu0  ;;  %vm1519_vm2 = vcmask 589312  }
 0x1ba   : > { %v1080_v3 = vsel %vm1057_vm3, %v1027_v57, %v1072_v60  ;;  %vm1060_vm0 = vcmp.gt.f32.partialorder %v1038_v61, 0.0  ;;  %v1075_v4 = vmul.f32 %v2425_v52, %v1038_v61  ;;  %v1030_v7 = vadd.f32 %v2420_v49, %v1029_v63 }
 0x1bb   : > { %1111 = vst.msk [vmem:[#allocation4 + $0x11] sm:$0xff] %vm1088_vm13, %v1080_v3 }
 0x1bc   : > { %v1083_v58 = vsel %vm1060_vm0, %v1038_v61, %v1075_v4  ;;  %vm1058_vm4 = vcmp.gt.f32.partialorder %v1030_v7, 0.0  ;;  %v1073_v2 = vmul.f32 %v2425_v52, %v1030_v7 }
 0x1bd   : > { %1114 = vst.msk [vmem:[#allocation4 + $0x41] sm:$0xff] %vm1088_vm13, %v1083_v58 }
 0x1be   : > { %v1081_v56 = vsel %vm1058_vm4, %v1030_v7, %v1073_v2  ;;  %v1549_v7 = vld [vmem:[%s2665_s6] sm:$0xff]  ;;  %v1855_v2 = vmov 0  }
 0x1bf   : > { %1112 = vst.msk [vmem:[#allocation4 + $0x21] sm:$0xff] %vm1088_vm13, %v1081_v56  ;;  %1823 = vset.pattern.permute.xlu1 %v1855_v2 }
 0x1c0   : > { %v2439_v62 = vld [vmem:[#allocation4 + $0x30] sm:$0xff] }
 0x1c1   : > { %v2441_v50 = vld [vmem:[#allocation4 + $0x31] sm:$0xff]  ;;  %1253 = vrot.lane.b32.xlu0 %v2439_v62, %s1847_s15  ;;  %1130 = vst.msk [vmem:[#allocation3 + $0x18] sm:$0xff] %vm1088_vm13, %v2439_v62 }
 0x1c2   : > { %1157 = vrot.lane.b32.xlu1 %v2441_v50, %s1843_s11  ;;  %v1233_v6 = vld [vmem:[#allocation4 + $0x10] sm:$0xff] }
 0x1c3   : > { %1128 = vst.msk [vmem:[#allocation3 + $0x8] sm:$0xff] %vm1088_vm13, %v1233_v6  ;;  %v2450_v8 = vld [vmem:[#allocation4 + $0x32] sm:$0xff] }
 0x1c4   : > { %v1236_v9 = vld [vmem:[#allocation4 + $0x40] sm:$0xff]  ;;  %v1136_v11 = vld [vmem:[#allocation4 + $0x11] sm:$0xff] }
 0x1c5   : > { %1302 = vrot.lane.b32.xlu0 %v2441_v50, %s1849_s19  ;;  %1131 = vst.msk [vmem:[#allocation3 + $0x20] sm:$0xff] %vm1088_vm13, %v1236_v9  ;;  %v2464_v5 = vld [vmem:[#allocation4 + $0x12] sm:$0xff]  ;;  %v1139_v12 = vld [vmem:[#allocation4 + $0x41] sm:$0xff] }
 0x1c6   : > { %1206 = vrot.lane.b32.xlu1 %v2450_v8, %s1845_s13  ;;  %v2457_v10 = vld [vmem:[#allocation4 + $0x20] sm:$0xff] }
 0x1c7   : > { %1129 = vst.msk [vmem:[#allocation3 + $0x10] sm:$0xff] %vm1088_vm13, %v2457_v10  ;;  %v1188_v13 = vld [vmem:[#allocation4 + $0x42] sm:$0xff] }
 0x1c8   : > { %v2480_v14 = vld [vmem:[#allocation4 + $0x21] sm:$0xff] }
 0x1c9   : > { %1351 = vrot.lane.b32.xlu0 %v2450_v8, %s1853_s10  ;;  %v2484_v15 = vld [vmem:[#allocation4 + $0x22] sm:$0xff] }
 0x1ca   : > { %1153 = vrot.lane.b32.xlu1 %v1136_v11, %s1843_s11 }
 0x1cd   : > { %1249 = vrot.lane.b32.xlu0 %v1233_v6, %s1847_s15 }
 0x1ce   : > { %1202 = vrot.lane.b32.xlu1 %v2464_v5, %s1845_s13 }
 0x1d1   : > { %1298 = vrot.lane.b32.xlu0 %v1136_v11, %s1849_s19  ;;  %v1832_v11 = vld [vmem:[%s2664_s5 + $0x20] ss:$0 sps:$4 sm:$0xff]  }
 0x1d2   : > { %1255 = vrot.lane.b32.xlu1 %v1236_v9, %s1847_s15 }
 0x1d5   : > { %1159 = vrot.lane.b32.xlu0 %v1139_v12, %s1843_s11 }
 0x1d6   : > { %1304 = vrot.lane.b32.xlu1 %v1139_v12, %s1849_s19 }
 0x1d9   : > { %1208 = vrot.lane.b32.xlu0 %v1188_v13, %s1845_s13 }
 0x1da   : > { %1353 = vrot.lane.b32.xlu1 %v1188_v13, %s1853_s10 }
 0x1dd   : > { %1401 = vrot.lane.b32.xlu0 %v1236_v9, %s1850_s26  ;;  %v1830_v9 = vld [vmem:[%s2664_s5 + $0x10] sm:$0xff]  }
 0x1de   : > { %1251 = vrot.lane.b32.xlu1 %v2457_v10, %s1847_s15 }
 0x1e1   : > { %1450 = vrot.lane.b32.xlu0 %v1139_v12, %s1851_s27 }
 0x1e5   : > { %1499 = vrot.lane.b32.xlu0 %v1188_v13, %s1852_s28 }
 0x1e9   : > { %1155 = vrot.lane.b32.xlu0 %v2480_v14, %s1843_s11 }
 0x1ed   : > { %1204 = vrot.lane.b32.xlu0 %v2484_v15, %s1845_s13 }
 0x1ef   : > { %v1785_v16 = vpop.f32.mrf.mxu0 }
 0x1f0   : > { %v1051_v17 = vadd.f32 %v1785_v16, %v2420_v49 }
 0x1f1   : > { %v1042_v18 = vpop.f32.mrf.mxu0 }
 0x1f2   : > { %vm1063_vm5 = vcmp.gt.f32.partialorder %v1051_v17, 0.0  ;;  %v1078_v19 = vmul.f32 %v2425_v52, %v1051_v17  ;;  %v1043_v20 = vadd.f32 %v2420_v49, %v1042_v18 }
 0x1f3   : > { %v1786_v21 = vpop.f32.mrf.mxu0 }
 0x1f4   : > { %v1086_v22 = vsel %vm1063_vm5, %v1051_v17, %v1078_v19  ;;  %vm1061_vm6 = vcmp.gt.f32.partialorder %v1043_v20, 0.0  ;;  %v1076_v23 = vmul.f32 %v2425_v52, %v1043_v20  ;;  %v1054_v24 = vadd.f32 %v1786_v21, %v2420_v49 }
 0x1f5   : > { %1117 = vst.msk [vmem:[#allocation4 + $0x71] sm:$0xff] %vm1088_vm13, %v1086_v22  ;;  %v1045_v25 = vpop.f32.mrf.mxu0 }
 0x1f6   : > { %v1084_v26 = vsel %vm1061_vm6, %v1043_v20, %v1076_v23  ;;  %vm1064_vm7 = vcmp.gt.f32.partialorder %v1054_v24, 0.0  ;;  %v1079_v27 = vmul.f32 %v2425_v52, %v1054_v24  ;;  %v1046_v28 = vadd.f32 %v2420_v49, %v1045_v25 }
 0x1f7   : > { %1115 = vst.msk [vmem:[#allocation4 + $0x51] sm:$0xff] %vm1088_vm13, %v1084_v26 }
 0x1f8   : > { %v1087_v29 = vsel %vm1064_vm7, %v1054_v24, %v1079_v27  ;;  %vm1062_vm8 = vcmp.gt.f32.partialorder %v1046_v28, 0.0  ;;  %v1077_v30 = vmul.f32 %v2425_v52, %v1046_v28 }
 0x1f9   : > { %1118 = vst.msk [vmem:[#allocation4 + $0x81] sm:$0xff] %vm1088_vm13, %v1087_v29 }
 0x1fa   : > { %v1085_v31 = vsel %vm1062_vm8, %v1046_v28, %v1077_v30 }
 0x1fb   : > { %1116 = vst.msk [vmem:[#allocation4 + $0x61] sm:$0xff] %vm1088_vm13, %v1085_v31 }
 0x1fc   : > { %v1239_v32 = vld [vmem:[#allocation4 + $0x70] sm:$0xff] }
 0x1fd   : > { %v1142_v33 = vld [vmem:[#allocation4 + $0x71] sm:$0xff]  ;;  %1261 = vrot.lane.b32.xlu0 %v1239_v32, %s1847_s15  ;;  %1134 = vst.msk [vmem:[#allocation3 + $0x38] sm:$0xff] %vm1088_vm13, %v1239_v32 }
 0x1fe   : > { %1165 = vrot.lane.b32.xlu1 %v1142_v33, %s1843_s11  ;;  %v1237_v34 = vld [vmem:[#allocation4 + $0x50] sm:$0xff] }
 0x1ff   : > { %1132 = vst.msk [vmem:[#allocation3 + $0x28] sm:$0xff] %vm1088_vm13, %v1237_v34  ;;  %v1191_v35 = vld [vmem:[#allocation4 + $0x72] sm:$0xff] }
 0x200   : > { %v1286_v37 = vld [vmem:[#allocation4 + $0x51] sm:$0xff]  ;;  %v1387_v39 = vld [vmem:[#allocation4 + $0x80] sm:$0xff] }
 0x201   : > { %1310 = vrot.lane.b32.xlu0 %v1142_v33, %s1849_s19  ;;  %v1335_v38 = vld [vmem:[#allocation4 + $0x52] sm:$0xff]  ;;  %v1436_v40 = vld [vmem:[#allocation4 + $0x81] sm:$0xff] }
 0x202   : > { %1214 = vrot.lane.b32.xlu1 %v1191_v35, %s1845_s13  ;;  %v1385_v36 = vld [vmem:[#allocation4 + $0x60] sm:$0xff] }
 0x203   : > { %1133 = vst.msk [vmem:[#allocation3 + $0x30] sm:$0xff] %vm1088_vm13, %v1385_v36  ;;  %v1485_v41 = vld [vmem:[#allocation4 + $0x82] sm:$0xff]  ;;  %vm1421_vm13 = vcmask 458112  }
 0x204   : > { %v1141_v42 = vld [vmem:[#allocation4 + $0x61] sm:$0xff] }
 0x205   : > { %1359 = vrot.lane.b32.xlu0 %v1191_v35, %s1853_s10  ;;  %v1190_v44 = vld [vmem:[#allocation4 + $0x62] sm:$0xff] }
 0x206   : > { %1407 = vrot.lane.b32.xlu1 %v1239_v32, %s1850_s26 }
 0x209   : > { %1257 = vrot.lane.b32.xlu0 %v1237_v34, %s1847_s15 }
 0x20a   : > { %1456 = vrot.lane.b32.xlu1 %v1142_v33, %s1851_s27 }
 0x20d   : > { %1306 = vrot.lane.b32.xlu0 %v1286_v37, %s1849_s19 }
 0x20e   : > { %1505 = vrot.lane.b32.xlu1 %v1191_v35, %s1852_s28 }
 0x211   : > { %1355 = vrot.lane.b32.xlu0 %v1335_v38, %s1853_s10 }
 0x212   : > { %1161 = vrot.lane.b32.xlu1 %v1286_v37, %s1843_s11 }
 0x215   : > { %1409 = vrot.lane.b32.xlu0 %v1387_v39, %s1850_s26 }
 0x216   : > { %1210 = vrot.lane.b32.xlu1 %v1335_v38, %s1845_s13 }
 0x219   : > { %1458 = vrot.lane.b32.xlu0 %v1436_v40, %s1851_s27 }
 0x21a   : > { %1403 = vrot.lane.b32.xlu1 %v1237_v34, %s1850_s26 }
 0x21d   : > { %1507 = vrot.lane.b32.xlu0 %v1485_v41, %s1852_s28 }
 0x21e   : > { %1452 = vrot.lane.b32.xlu1 %v1286_v37, %s1851_s27 }
 0x221   : > { %1163 = vrot.lane.b32.xlu0 %v1141_v42, %s1843_s11 }
 0x222   : > { %1501 = vrot.lane.b32.xlu1 %v1335_v38, %s1852_s28 }
 0x225   : > { %1212 = vrot.lane.b32.xlu0 %v1190_v44, %s1845_s13 }
 0x226   : > { %1263 = vrot.lane.b32.xlu1 %v1387_v39, %s1847_s15 }
 0x229   : > { %1347 = vrot.lane.b32.xlu0 %v2464_v5, %s1853_s10 }
 0x22a   : > { %1312 = vrot.lane.b32.xlu1 %v1436_v40, %s1849_s19 }
 0x22d   : > { %1405 = vrot.lane.b32.xlu0 %v1385_v36, %s1850_s26 }
 0x22e   : > { %1361 = vrot.lane.b32.xlu1 %v1485_v41, %s1853_s10 }
 0x231   : > { %1454 = vrot.lane.b32.xlu0 %v1141_v42, %s1851_s27 }
 0x232   : > { %1259 = vrot.lane.b32.xlu1 %v1385_v36, %s1847_s15 }
 0x233   : > { %v1254_v48 = vpop.permute.xlu0 %1253 }
 0x234   : > { %v1158_v47 = vpop.permute.xlu1 %1157 }
 0x235   : > { %1179 = vst.msk [vmem:[#allocation3 + $0x18] sm:$0xff] %vm1175_vm15, %v1158_v47  ;;  %1503 = vrot.lane.b32.xlu0 %v1190_v44, %s1852_s28 }
 0x236   : > { %1308 = vrot.lane.b32.xlu1 %v1141_v42, %s1849_s19 }
 0x237   : > { %v1303_v51 = vpop.permute.xlu0 %1302 }
 0x238   : > { %v1207_v49 = vpop.permute.xlu1 %1206 }
 0x239   : > { %1228 = vst.msk [vmem:[#allocation3 + $0x18] sm:$0xff] %vm1224_vm1, %v1207_v49  ;;  %1397 = vrot.lane.b32.xlu0 %v2457_v10, %s1850_s26  ;;  %v1831_v10 = vld [vmem:[%s2664_s5 + $0x18] sm:$0xff]  }
 0x23a   : > { %1357 = vrot.lane.b32.xlu1 %v1190_v44, %s1853_s10 }
 0x23b   : > { %v1352_v53 = vpop.permute.xlu0 %1351 }
 0x23c   : > { %v1154_v52 = vpop.permute.xlu1 %1153 }
 0x23d   : > { %1177 = vst.msk [vmem:[#allocation3 + $0x8] sm:$0xff] %vm1175_vm15, %v1154_v52  ;;  %1446 = vrot.lane.b32.xlu0 %v2480_v14, %s1851_s27 }
 0x23e   : > { %1300 = vrot.lane.b32.xlu1 %v2480_v14, %s1849_s19 }
 0x23f   : > { %v1250_v55 = vpop.permute.xlu0 %1249 }
 0x240   : > { %v1203_v54 = vpop.permute.xlu1 %1202  ;;  %1274 = vst.msk [vmem:[#allocation3] sm:$0xff] %vm1273_vm9, %v1250_v55 }
 0x241   : > { %1226 = vst.msk [vmem:[#allocation3 + $0x8] sm:$0xff] %vm1224_vm1, %v1203_v54  ;;  %1495 = vrot.lane.b32.xlu0 %v2484_v15, %s1852_s28 }
 0x242   : > { %1349 = vrot.lane.b32.xlu1 %v2484_v15, %s1853_s10 }
 0x243   : > { %v1299_v1 = vpop.permute.xlu0 %1298 }
 0x244   : > { %v1256_v57 = vpop.permute.xlu1 %1255  ;;  %1323 = vst.msk [vmem:[#allocation3] sm:$0xff] %vm1322_vm10, %v1299_v1 }
 0x245   : > { %1277 = vst.msk [vmem:[#allocation3 + $0x18] sm:$0xff] %vm1273_vm9, %v1256_v57 }
 0x246   : > { %1399 = vrot.lane.b32.xlu1 %v2439_v62, %s1850_s26 }
 0x247   : > { %v1160_v60 = vpop.permute.xlu0 %1159 }
 0x248   : > { %v1305_v59 = vpop.permute.xlu1 %1304  ;;  %1180 = vst.msk [vmem:[#allocation3 + $0x20] sm:$0xff] %vm1175_vm15, %v1160_v60 }
 0x249   : > { %1326 = vst.msk [vmem:[#allocation3 + $0x18] sm:$0xff] %vm1322_vm10, %v1305_v59 }
 0x24a   : > { %1448 = vrot.lane.b32.xlu1 %v2441_v50, %s1851_s27  ;;  %v1828_v50 = vld [vmem:[%s2664_s5] sm:$0xff]  }
 0x24b   : > { %v1209_v63 = vpop.permute.xlu0 %1208 }
 0x24c   : > { %v1354_v61 = vpop.permute.xlu1 %1353  ;;  %1229 = vst.msk [vmem:[#allocation3 + $0x20] sm:$0xff] %vm1224_vm1, %v1209_v63 }
 0x24d   : > { %1375 = vst.msk [vmem:[#allocation3 + $0x18] sm:$0xff] %vm1371_vm11, %v1354_v61 }
 0x24e   : > { %1497 = vrot.lane.b32.xlu1 %v2450_v8, %s1852_s28  ;;  %v1829_v8 = vld [vmem:[%s2664_s5 + $0x8] sm:$0xff]   ;;  %s276_s28 = scalar_lea.vmem %s2666_s7, %s1717_s23 }
 0x24f   : > { %v1402_v4 = vpop.permute.xlu0 %1401 }
 0x250   : > { %v1252_v3 = vpop.permute.xlu1 %1251 }
 0x251   : > { %1275 = vst.msk [vmem:[#allocation3 + $0x8] sm:$0xff] %vm1273_vm9, %v1252_v3 }
 0x252   : > { %1552 = vperm.xlu1 %1823, %v1549_v7  }
 0x253   : > { %v1451_v58 = vpop.permute.xlu0 %1450 }
 0x257   : > { %v1500_v56 = vpop.permute.xlu0 %1499 }
 0x25b   : > { %v1156_v62 = vpop.permute.xlu0 %1155 }
 0x25c   : > { %1178 = vst.msk [vmem:[#allocation3 + $0x10] sm:$0xff] %vm1175_vm15, %v1156_v62 }
 0x25f   : > { %v1205_v6 = vpop.permute.xlu0 %1204  ;;  %1583 = vxpose.xlu0.c.b16.start [1/5] (short) (narrow) %v1828_v50, 16 }
 0x260   : > { %1227 = vst.msk [vmem:[#allocation3 + $0x10] sm:$0xff] %vm1224_vm1, %v1205_v6 }
 0x261   : > { %1276 = vst.msk [vmem:[#allocation3 + $0x10] sm:$0xff] %vm1273_vm9, %v1254_v48 }
 0x262   : > { %1325 = vst.msk [vmem:[#allocation3 + $0x10] sm:$0xff] %vm1322_vm10, %v1303_v51 }
 0x263   : > { %1374 = vst.msk [vmem:[#allocation3 + $0x10] sm:$0xff] %vm1371_vm11, %v1352_v53  ;;  %1584 = vxpose.xlu0.c.b16.cont [2/5] (short) (narrow) %v1829_v8, 16 }
 0x264   : > { %1424 = vst.msk [vmem:[#allocation3 + $0x10] sm:$0xff] %vm1421_vm13, %v1402_v4 }
 0x265   : > { %1473 = vst.msk [vmem:[#allocation3 + $0x10] sm:$0xff] %vm1470_vm14, %v1451_v58 }
 0x266   : > { %1522 = vst.msk [vmem:[#allocation3 + $0x10] sm:$0xff] %vm1519_vm2, %v1500_v56 }
 0x267   : > { %1585 = vxpose.xlu0.c.b16.cont [3/5] (short) (narrow) %v1830_v9, 16 }
 0x26b   : > { %1586 = vxpose.xlu0.c.b16.cont [4/5] (short) (narrow) %v1831_v10, 16 }
 0x26d   : > { %v1530_v60 = vld [vmem:[#allocation3 + $0x10] sm:$0xff] }
 0x26f   : > { %v1262_v12 = vpop.permute.xlu0 %1261  ;;  %1587 = vxpose.xlu0.c.b16.end [5/5] (short) (narrow) %v1832_v11, 16 }
 0x270   : > { %v1166_v5 = vpop.permute.xlu1 %1165 }
 0x271   : > { %1183 = vst.msk [vmem:[#allocation3 + $0x38] sm:$0xff] %vm1175_vm15, %v1166_v5 }
 0x273   : > { %v1311_v14 = vpop.permute.xlu0 %1310 }
 0x274   : > { %v1215_v13 = vpop.permute.xlu1 %1214 }
 0x275   : > { %1232 = vst.msk [vmem:[#allocation3 + $0x38] sm:$0xff] %vm1224_vm1, %v1215_v13 }
 0x277   : > { %v1360_v16 = vpop.permute.xlu0 %1359 }
 0x278   : > { %v2598_v15 = vpop.permute.xlu1 %1407  ;;  %1824 = vset.pattern.permute.xlu0 %v1855_v2 }
 0x27b   : > { %v1258_v18 = vpop.permute.xlu0 %1257 }
 0x27c   : > { %v1457_v17 = vpop.permute.xlu1 %1456  ;;  %1278 = vst.msk [vmem:[#allocation3 + $0x20] sm:$0xff] %vm1273_vm9, %v1258_v18 }
 0x27f   : > { %v1307_v20 = vpop.permute.xlu0 %1306 }
 0x280   : > { %v1506_v19 = vpop.permute.xlu1 %1505  ;;  %1327 = vst.msk [vmem:[#allocation3 + $0x20] sm:$0xff] %vm1322_vm10, %v1307_v20 }
 0x283   : > { %v1356_v22 = vpop.permute.xlu0 %1355 }
 0x284   : > { %v1162_v21 = vpop.permute.xlu1 %1161  ;;  %1376 = vst.msk [vmem:[#allocation3 + $0x20] sm:$0xff] %vm1371_vm11, %v1356_v22 }
 0x285   : > { %1181 = vst.msk [vmem:[#allocation3 + $0x28] sm:$0xff] %vm1175_vm15, %v1162_v21 }
 0x287   : > { %v1410_v24 = vpop.permute.xlu0 %1409 }
 0x288   : > { %v1211_v23 = vpop.permute.xlu1 %1210 }
 0x289   : > { %1230 = vst.msk [vmem:[#allocation3 + $0x28] sm:$0xff] %vm1224_vm1, %v1211_v23 }
 0x28b   : > { %v1459_v26 = vpop.permute.xlu0 %1458 }
 0x28c   : > { %v1404_v25 = vpop.permute.xlu1 %1403 }
 0x28d   : > { %1425 = vst.msk [vmem:[#allocation3 + $0x18] sm:$0xff] %vm1421_vm13, %v1404_v25 }
 0x28f   : > { %v1508_v28 = vpop.permute.xlu0 %1507 }
 0x290   : > { %v1453_v27 = vpop.permute.xlu1 %1452 }
 0x291   : > { %1474 = vst.msk [vmem:[#allocation3 + $0x18] sm:$0xff] %vm1470_vm14, %v1453_v27 }
 0x293   : > { %v1164_v30 = vpop.permute.xlu0 %1163 }
 0x294   : > { %v1502_v29 = vpop.permute.xlu1 %1501  ;;  %1182 = vst.msk [vmem:[#allocation3 + $0x30] sm:$0xff] %vm1175_vm15, %v1164_v30  ;;  %vm1599_vm15 = vcmask 588800  }
 0x295   : > { %1523 = vst.msk [vmem:[#allocation3 + $0x18] sm:$0xff] %vm1519_vm2, %v1502_v29 }
 0x297   : > { %v1213_v32 = vpop.permute.xlu0 %1212 }
 0x298   : > { %v1264_v31 = vpop.permute.xlu1 %1263  ;;  %1231 = vst.msk [vmem:[#allocation3 + $0x30] sm:$0xff] %vm1224_vm1, %v1213_v32  ;;  %vm1655_vm1 = vcmask 523264  }
 0x299   : > { %1281 = vst.msk [vmem:[#allocation3 + $0x38] sm:$0xff] %vm1273_vm9, %v1264_v31  ;;  %1280 = vst.msk [vmem:[#allocation3 + $0x30] sm:$0xff] %vm1273_vm9, %v1262_v12 }
 0x29a   : > { %1329 = vst.msk [vmem:[#allocation3 + $0x30] sm:$0xff] %vm1322_vm10, %v1311_v14 }
 0x29b   : > { %1378 = vst.msk [vmem:[#allocation3 + $0x30] sm:$0xff] %vm1371_vm11, %v1360_v16  ;;  %v1348_v34 = vpop.permute.xlu0 %1347 }
 0x29c   : > { %v1313_v33 = vpop.permute.xlu1 %1312  ;;  %1428 = vst.msk [vmem:[#allocation3 + $0x30] sm:$0xff] %vm1421_vm13, %v1410_v24  ;;  %v1531_v1 = vld [vmem:[#allocation3 + $0x18] sm:$0xff] }
 0x29d   : > { %1330 = vst.msk [vmem:[#allocation3 + $0x38] sm:$0xff] %vm1322_vm10, %v1313_v33  ;;  %v1537_v61 = vpack.c.bf16 %v1531_v1, %v1530_v60 }
 0x29e   : > { %1372 = vst.msk [vmem:[#allocation3] sm:$0xff] %vm1371_vm11, %v1348_v34 }
 0x29f   : > { %1477 = vst.msk [vmem:[#allocation3 + $0x30] sm:$0xff] %vm1470_vm14, %v1459_v26  ;;  %v1406_v36 = vpop.permute.xlu0 %1405  ;;  %v1607_v3 = vsel %vm1599_vm15, %v1537_v61, 0 }
 0x2a0   : > { %1526 = vst.msk [vmem:[#allocation3 + $0x30] sm:$0xff] %vm1519_vm2, %v1508_v28  ;;  %v1362_v35 = vpop.permute.xlu1 %1361 }
 0x2a1   : > { %1379 = vst.msk [vmem:[#allocation3 + $0x38] sm:$0xff] %vm1371_vm11, %v1362_v35 }
 0x2a2   : > { %1426 = vst.msk [vmem:[#allocation3 + $0x20] sm:$0xff] %vm1421_vm13, %v1406_v36  ;;  %1429 = vst.msk [vmem:[#allocation3 + $0x38] sm:$0xff] %vm1421_vm13, %v2523_v43 }
 0x2a3   : > { %1478 = vst.msk [vmem:[#allocation3 + $0x38] sm:$0xff] %vm1470_vm14, %v2527_v45  ;;  %v1455_v38 = vpop.permute.xlu0 %1454 }
 0x2a4   : > { %1527 = vst.msk [vmem:[#allocation3 + $0x38] sm:$0xff] %vm1519_vm2, %v2534_v46  ;;  %v1260_v37 = vpop.permute.xlu1 %1259 }
 0x2a5   : > { %1279 = vst.msk [vmem:[#allocation3 + $0x28] sm:$0xff] %vm1273_vm9, %v1260_v37 }
 0x2a6   : > { %1475 = vst.msk [vmem:[#allocation3 + $0x20] sm:$0xff] %vm1470_vm14, %v1455_v38 }
 0x2a7   : > { %v1504_v40 = vpop.permute.xlu0 %1503  ;;  %v1534_v41 = vld [vmem:[#allocation3 + $0x30] sm:$0xff] }
 0x2a8   : > { %v1309_v39 = vpop.permute.xlu1 %1308  ;;  %1524 = vst.msk [vmem:[#allocation3 + $0x20] sm:$0xff] %vm1519_vm2, %v1504_v40 }
 0x2a9   : > { %1328 = vst.msk [vmem:[#allocation3 + $0x28] sm:$0xff] %vm1322_vm10, %v1309_v39 }
 0x2ab   : > { %v1535_v42 = vld [vmem:[#allocation3 + $0x38] sm:$0xff]  ;;  %v1398_v44 = vpop.permute.xlu0 %1397 }
 0x2ac   : > { %v1358_v43 = vpop.permute.xlu1 %1357  ;;  %v1539_v45 = vpack.c.bf16 %v1535_v42, %v1534_v41  ;;  %1422 = vst.msk [vmem:[#allocation3] sm:$0xff] %vm1421_vm13, %v1398_v44 }
 0x2ad   : > { %1377 = vst.msk [vmem:[#allocation3 + $0x28] sm:$0xff] %vm1371_vm11, %v1358_v43 }
 0x2ae   : > { %1427 = vst.msk [vmem:[#allocation3 + $0x28] sm:$0xff] %vm1421_vm13, %v2598_v15  ;;  %v1613_v46 = vsel %vm1599_vm15, %v1539_v45, 0 }
 0x2af   : > { %1476 = vst.msk [vmem:[#allocation3 + $0x28] sm:$0xff] %vm1470_vm14, %v1457_v17  ;;  %1788 = vmatpush3.bf16.xpose.msra.mxu1 %v1613_v46  ;;  %v1447_v48 = vpop.permute.xlu0 %1446  ;;  %v1532_v52 = vld [vmem:[#allocation3 + $0x20] sm:$0xff] }
 0x2b0   : > { %1525 = vst.msk [vmem:[#allocation3 + $0x28] sm:$0xff] %vm1519_vm2, %v1506_v19  ;;  %v1301_v47 = vpop.permute.xlu1 %1300  ;;  %1789 = vmatprep.subr.bf16.mxu1 %v1841_v0 }
 0x2b1   : > { %1324 = vst.msk [vmem:[#allocation3 + $0x8] sm:$0xff] %vm1322_vm10, %v1301_v47 }
 0x2b2   : > { %1471 = vst.msk [vmem:[#allocation3] sm:$0xff] %vm1470_vm14, %v1447_v48 }
 0x2b3   : > { %v1496_v51 = vpop.permute.xlu0 %1495 }
 0x2b4   : > { %v1350_v49 = vpop.permute.xlu1 %1349  ;;  %1520 = vst.msk [vmem:[#allocation3] sm:$0xff] %vm1519_vm2, %v1496_v51 }
 0x2b5   : > { %1373 = vst.msk [vmem:[#allocation3 + $0x8] sm:$0xff] %vm1371_vm11, %v1350_v49 }
 0x2b7   : > { %v1533_v53 = vld [vmem:[#allocation3 + $0x28] sm:$0xff] }
 0x2b8   : > { %v1400_v54 = vpop.permute.xlu1 %1399  ;;  %v1538_v55 = vpack.c.bf16 %v1533_v53, %v1532_v52 }
 0x2b9   : > { %1423 = vst.msk [vmem:[#allocation3 + $0x8] sm:$0xff] %vm1421_vm13, %v1400_v54 }
 0x2ba   : > { %v1610_v57 = vsel %vm1599_vm15, %v1538_v55, 0 }
 0x2bb   : > { %1790 = vmatpush3.bf16.xpose.msra.mxu1 %v1610_v57  ;;  %v1528_v4 = vld [vmem:[#allocation3] sm:$0xff] }
 0x2bc   : > { %v1449_v59 = vpop.permute.xlu1 %1448  ;;  %1791 = vmatprep.subr.bf16.mxu1 %v1841_v0 }
 0x2bd   : > { %1472 = vst.msk [vmem:[#allocation3 + $0x8] sm:$0xff] %vm1470_vm14, %v1449_v59 }
 0x2c0   : > { %v1498_v63 = vpop.permute.xlu1 %1497 }
 0x2c1   : > { %1521 = vst.msk [vmem:[#allocation3 + $0x8] sm:$0xff] %vm1519_vm2, %v1498_v63  ;;  %v1591_v56 = vpop.trf.xlu0 }
 0x2c3   : > { %1792 = vmatpush3.bf16.xpose.msra.mxu1 %v1607_v3 }
 0x2c4   : > { %1793 = vmatprep.subr.bf16.mxu1 %v1841_v0 }
 0x2c8   : > { %v1529_v7 = vld [vmem:[#allocation3 + $0x8] sm:$0xff] }
 0x2c9   : > { %v1536_v58 = vpack.c.bf16 %v1529_v7, %v1528_v4 }
 0x2cb   : > { %v1604_v2 = vsel %vm1599_vm15, %v1536_v58, 0 }
 0x2cc   : > { %1794 = vmatpush3.bf16.xpose.msra.mxu1 %v1604_v2 }
 0x2cd   : > { %v1553_v62 = vpop.permute.xlu1 %1552 }
 0x2d3   : > { %1796 = vmatmul.mubr.msk.bf16.vlgmr.msra.gmra.mxu1 %vm1599_vm15, %v1591_v56 }
 0x393   : > { %v1649_v50 = vpop.f32.mrf.mxu1 }
 0x394   : > { %v1650_v6 = vadd.f32 %v1649_v50, %v1553_v62 }
 0x395   : > { %v1797_v8 = vpop.f32.mrf.mxu1 }
 0x396   : > { %1656 = vst.msk [vmem:[%s276_s28] sm:$0xff] %vm1655_vm1, %v1650_v6 }
 0x397   : > { %v1652_v0 = vpop.f32.mrf.mxu1 }
 0x399   : > { %v1798_v9 = vpop.f32.mrf.mxu1 }
 0x39a PF: > { %s17_s24 = sadd.s32 1, %s1839_s24  }
 0x39b   : > { %p14_p4 = scmp.ge.s32.totalorder %s17_s24, 4  }
 0x39d   :  { %16 = sbr.rel (!%p14_p4) target bundleno = 1 (0x1), region = 89 }

</bundles_post_ra>
